<compile_context>
chip_gen: v7x
topology: tpu7x:2x2x1
jax: 0.10.0
libtpu: 0.0.40
codegen_flags: <defaults>
</compile_context>

<pallas_src>
import numpy as np
import jax
import jax.numpy as jnp
from jax import lax
from jax.experimental import pallas as pl
from jax.experimental.pallas import tpu as pltpu


# ------------------------------ fused kernel --------------------------------

def _lenet_kernel(x_ref,
                  band1_ref, b1_ref, p1re_ref, p1ro_ref, p1ce_ref, p1co_ref,
                  band2_ref, b2_ref, p2re_ref, p2ro_ref, p2ce_ref, p2co_ref,
                  fc1w_ref, fc1b_ref, fc2w_ref, fc2b_ref, fc3w_ref, fc3b_ref,
                  out_ref, p2s_ref):
    """Whole LeNet forward for one batch tile; everything stays in VMEM.

    x_ref   : (bt, H, C*W)         rows = h, lanes = c*W + w
    band*   : (KH, C*W, O*OW)      Toeplitz conv weights, one slab per kernel row
    p*re/ro : (OH/2, OH)           0/1 row-pool selectors (even / odd rows)
    p*ce/co : (O*OW, O*OW/2)       0/1 col-pool selectors (even / odd cols)
    fc1w    : (PH2, O2*PW2, 120)   fc1 weight, one slab per pooled row h
    p2s_ref : (PH2, bt, O2*PW2)    VMEM scratch: pooled conv2 output, batch-major
    out_ref : (bt, OUT_PAD)        lane-dense (multiple of 128) logits
    """
    bt = x_ref.shape[0]
    k1 = band1_ref.shape[0]
    k2 = band2_ref.shape[0]
    oh1 = p1re_ref.shape[1]
    oh2 = p2re_ref.shape[1]
    ph2 = fc1w_ref.shape[0]

    def dot(a, b):
        return jnp.dot(a, b, preferred_element_type=jnp.float32)

    def conv_relu_pool(act, band_ref, pre_ref, pro_ref, pce_ref, pco_ref,
                       brow_ref, kh, oh):
        # valid conv via precomputed band matrices; the kernel-row shift is a
        # free static sublane slice of the activation (no MXU / XLU matmul).
        y = dot(act[0:oh, :], band_ref[0])
        for i in range(1, kh):
            y = y + dot(act[i:i + oh, :], band_ref[i])
        # 2x2 stride-2 max-pool via 0/1 selection matmuls (rows, then columns).
        yr = jnp.maximum(dot(pre_ref[...], y), dot(pro_ref[...], y))
        p = jnp.maximum(dot(yr, pce_ref[...]), dot(yr, pco_ref[...]))
        # per-channel bias and relu commute with the max-pool.
        return jnp.maximum(p + brow_ref[...], 0.0)

    def per_image(img, carry):
        act = x_ref[img]                                         # (H, C*W)
        p1 = conv_relu_pool(act, band1_ref, p1re_ref, p1ro_ref,
                            p1ce_ref, p1co_ref, b1_ref, k1, oh1)  # (14, 6*14)
        p2 = conv_relu_pool(p1, band2_ref, p2re_ref, p2ro_ref,
                            p2ce_ref, p2co_ref, b2_ref, k2, oh2)  # (5, 16*5)
        # scatter this image's pooled rows into the batch-major FC scratch.
        for h in range(ph2):
            p2s_ref[h, pl.ds(img, 1), :] = p2[h:h + 1, :]
        return carry

    lax.fori_loop(0, bt, per_image, 0)

    # ---------- batched FC stage: every matmul has M = batch_tile ----------
    f1 = dot(p2s_ref[0], fc1w_ref[0])
    for h in range(1, ph2):
        f1 = f1 + dot(p2s_ref[h], fc1w_ref[h])
    f1 = jnp.maximum(f1 + fc1b_ref[...], 0.0)                    # (bt, 120)
    f2 = jnp.maximum(dot(f1, fc2w_ref[...]) + fc2b_ref[...], 0.0)  # (bt, 84)
    out_ref[...] = dot(f2, fc3w_ref[...]) + fc3b_ref[...]        # (bt, OUT_PAD)


# ---------------------- one-time weight re-layout (init) --------------------

def _conv_band(w_oihw, w_in):
    """band[i]: (C*W_in, O*OW) Toeplitz matrix; input cols c*W_in+w, output o*OW+ow."""
    w = np.asarray(w_oihw, np.float32)
    o_ch, c_ch, kh, kw = w.shape
    ow_n = w_in - kw + 1
    band = np.zeros((kh, c_ch * w_in, o_ch * ow_n), np.float32)
    ow = np.arange(ow_n)
    for i in range(kh):
        for j in range(kw):
            for c in range(c_ch):
                for o in range(o_ch):
                    band[i, c * w_in + j + ow, o * ow_n + ow] = w[o, c, i, j]
    return band


def _row_pool_sel(oh):
    even = np.zeros((oh // 2, oh), np.float32)
    odd = np.zeros((oh // 2, oh), np.float32)
    r = np.arange(oh // 2)
    even[r, 2 * r] = 1.0
    odd[r, 2 * r + 1] = 1.0
    return even, odd


def _col_pool_sel(n_ch, ow):
    owh = ow // 2
    even = np.zeros((n_ch * ow, n_ch * owh), np.float32)
    odd = np.zeros_like(even)
    w = np.arange(owh)
    for c in range(n_ch):
        even[c * ow + 2 * w, c * owh + w] = 1.0
        odd[c * ow + 2 * w + 1, c * owh + w] = 1.0
    return even, odd


def prepare_lenet_kernel_params(params, in_hw=(32, 32)):
    """Precompute all kernel-side weight layouts (done once, outside the hot path)."""
    h, w = in_hw
    w1 = np.asarray(params["conv1_w"], np.float32)
    b1 = np.asarray(params["conv1_b"], np.float32)
    w2 = np.asarray(params["conv2_w"], np.float32)
    b2 = np.asarray(params["conv2_b"], np.float32)
    o1, _, k1, _ = w1.shape
    o2, _, k2, _ = w2.shape
    oh1, ow1 = h - k1 + 1, w - k1 + 1
    assert oh1 % 2 == 0 and ow1 % 2 == 0
    ph1, pw1 = oh1 // 2, ow1 // 2
    oh2, ow2 = ph1 - k2 + 1, pw1 - k2 + 1
    assert oh2 % 2 == 0 and ow2 % 2 == 0
    ph2, pw2 = oh2 // 2, ow2 // 2

    fc1_w = np.asarray(params["fc1_w"], np.float32)        # (120, O2*PH2*PW2)
    assert fc1_w.shape[1] == o2 * ph2 * pw2, "fc1 expects 16*5*5 features (32x32 input)"
    n_fc1 = fc1_w.shape[0]
    # torch flatten order of pooled conv2 is (o, h, w); our rows are h, cols o*PW2+w.
    fc1_k = fc1_w.T.reshape(o2, ph2, pw2, n_fc1)            # [o, h, w, n]
    fc1_k = fc1_k.transpose(1, 0, 2, 3).reshape(ph2, o2 * pw2, n_fc1)

    # fc3 padded to a multiple of 128 output lanes -> lane-dense final store.
    fc3_w = np.asarray(params["fc3_w"], np.float32).T       # (84, out_dim)
    fc3_b = np.asarray(params["fc3_b"], np.float32)
    out_dim = fc3_w.shape[1]
    pad_cols = (-out_dim) % 128
    fc3_w = np.pad(fc3_w, ((0, 0), (0, pad_cols)))
    fc3_b = np.pad(fc3_b, ((0, pad_cols)))[None, :]

    p1re, p1ro = _row_pool_sel(oh1)
    p1ce, p1co = _col_pool_sel(o1, ow1)
    p2re, p2ro = _row_pool_sel(oh2)
    p2ce, p2co = _col_pool_sel(o2, ow2)

    kp = dict(
        band1=_conv_band(w1, w),
        b1row=np.repeat(b1, pw1)[None, :],
        p1re=p1re, p1ro=p1ro, p1ce=p1ce, p1co=p1co,
        band2=_conv_band(w2, pw1),
        b2row=np.repeat(b2, pw2)[None, :],
        p2re=p2re, p2ro=p2ro, p2ce=p2ce, p2co=p2co,
        fc1_w=fc1_k,
        fc1_b=np.asarray(params["fc1_b"], np.float32)[None, :],
        fc2_w=np.asarray(params["fc2_w"], np.float32).T,
        fc2_b=np.asarray(params["fc2_b"], np.float32)[None, :],
        fc3_w=fc3_w,
        fc3_b=fc3_b,
    )
    return {k: jnp.asarray(v, jnp.float32) for k, v in kp.items()}


_WEIGHT_ORDER = (
    "band1", "b1row", "p1re", "p1ro", "p1ce", "p1co",
    "band2", "b2row", "p2re", "p2ro", "p2ce", "p2co",
    "fc1_w", "fc1_b", "fc2_w", "fc2_b", "fc3_w", "fc3_b",
)


# ------------------------------ forward wrapper ------------------------------

def lenet_forward(kparams, x, out_dim, *, batch_tile=128):
    """Single fused pallas_call for the whole LeNet forward. x is NCHW float."""
    x = x.astype(jnp.float32)
    b, c, h, w = x.shape
    # Channel-major lane layout expected by the band matrices: col = c*W + w.
    x = jnp.transpose(x, (0, 2, 1, 3)).reshape(b, h, c * w)

    bt = b if b <= batch_tile else batch_tile
    pad = (-b) % bt
    if pad:
        x = jnp.pad(x, ((0, pad), (0, 0), (0, 0)))
    n_tiles = (b + pad) // bt

    weights = [kparams[name] for name in _WEIGHT_ORDER]
    ph2, fc_in, _ = kparams["fc1_w"].shape
    out_pad = kparams["fc3_w"].shape[1]

    def const_index_map(ndim):
        return lambda t: (0,) * ndim

    in_specs = [pl.BlockSpec((bt, h, c * w), lambda t: (t, 0, 0))]
    in_specs += [pl.BlockSpec(wt.shape, const_index_map(wt.ndim)) for wt in weights]

    out = pl.pallas_call(
        _lenet_kernel,
        out_shape=jax.ShapeDtypeStruct((b + pad, out_pad), jnp.float32),
        grid=(n_tiles,),
        in_specs=in_specs,
        out_specs=pl.BlockSpec((bt, out_pad), lambda t: (t, 0)),
        scratch_shapes=[pltpu.VMEM((ph2, bt, fc_in), jnp.float32)],
        compiler_params=pltpu.CompilerParams(
            dimension_semantics=("parallel",)),
    )(x, *weights)
    return out[:b, :out_dim]


# ------------------------------ parameter init -------------------------------

def init_lenet_params(key, in_channels, out_dim):
    def uinit(k, shape, fan_in):
        bound = 1.0 / float(fan_in) ** 0.5
        return jax.random.uniform(k, shape, jnp.float32, -bound, bound)

    ks = jax.random.split(key, 10)
    return {
        "conv1_w": uinit(ks[0], (6, in_channels, 5, 5), in_channels * 25),
        "conv1_b": uinit(ks[1], (6,), in_channels * 25),
        "conv2_w": uinit(ks[2], (16, 6, 5, 5), 6 * 25),
        "conv2_b": uinit(ks[3], (16,), 6 * 25),
        "fc1_w":   uinit(ks[4], (120, 16 * 5 * 5), 16 * 5 * 5),
        "fc1_b":   uinit(ks[5], (120,), 16 * 5 * 5),
        "fc2_w":   uinit(ks[6], (84, 120), 120),
        "fc2_b":   uinit(ks[7], (84,), 120),
        "fc3_w":   uinit(ks[8], (out_dim, 84), 84),
        "fc3_b":   uinit(ks[9], (out_dim,), 84),
    }


# --------------------------- pure-JAX reference ------------------------------

def lenet_ref(params, x):
    def conv(x, w, b):
        y = jax.lax.conv_general_dilated(
            x, w, (1, 1), "VALID",
            dimension_numbers=("NCHW", "OIHW", "NCHW"))
        return y + b.reshape(1, -1, 1, 1)

    def maxpool2(x):
        b, c, h, w = x.shape
        return x.reshape(b, c, h // 2, 2, w // 2, 2).max(axis=(3, 5))

    out = jax.nn.relu(conv(x, params["conv1_w"], params["conv1_b"]))
    out = maxpool2(out)
    out = jax.nn.relu(conv(out, params["conv2_w"], params["conv2_b"]))
    out = maxpool2(out)
    out = out.reshape(out.shape[0], -1)
    out = jax.nn.relu(out @ params["fc1_w"].T + params["fc1_b"])
    out = jax.nn.relu(out @ params["fc2_w"].T + params["fc2_b"])
    return out @ params["fc3_w"].T + params["fc3_b"]


# ---------------------------------- main -------------------------------------

if __name__ == "__main__":
    key = jax.random.PRNGKey(0)
    k_params, k_x = jax.random.split(key)

    # LeNet's fc1 (16*5*5 inputs) implies a 32x32 spatial input.
    in_channels, out_dim, batch = 1, 10, 2
    params = init_lenet_params(k_params, in_channels, out_dim)
    kparams = prepare_lenet_kernel_params(params, in_hw=(32, 32))
    x = jax.random.normal(k_x, (batch, in_channels, 32, 32), dtype=jnp.float32)

    fwd = jax.jit(lenet_forward, static_argnums=(2,))
    out = jax.block_until_ready(fwd(kparams, x, out_dim))
    assert out.shape == (batch, out_dim), out.shape

    ref = jax.block_until_ready(lenet_ref(params, x))
    assert jnp.all(jnp.isfinite(out))
    assert jnp.allclose(out, ref, atol=5e-2, rtol=5e-2), (
        f"mismatch: max abs diff {jnp.max(jnp.abs(out - ref))}")

    print("KERNEL_OK")
</pallas_src>

<mosaic_0001>
module attributes {stable_mosaic.version = 11 : i64} {
  func.func @_lenet_kernel(%arg0: i32, %arg1: memref<2x32x32xf32, #tpu.memory_space<vmem>>, %arg2: memref<5x32x168xf32, #tpu.memory_space<vmem>>, %arg3: memref<1x84xf32, #tpu.memory_space<vmem>>, %arg4: memref<14x28xf32, #tpu.memory_space<vmem>>, %arg5: memref<14x28xf32, #tpu.memory_space<vmem>>, %arg6: memref<168x84xf32, #tpu.memory_space<vmem>>, %arg7: memref<168x84xf32, #tpu.memory_space<vmem>>, %arg8: memref<5x84x160xf32, #tpu.memory_space<vmem>>, %arg9: memref<1x80xf32, #tpu.memory_space<vmem>>, %arg10: memref<5x10xf32, #tpu.memory_space<vmem>>, %arg11: memref<5x10xf32, #tpu.memory_space<vmem>>, %arg12: memref<160x80xf32, #tpu.memory_space<vmem>>, %arg13: memref<160x80xf32, #tpu.memory_space<vmem>>, %arg14: memref<5x80x120xf32, #tpu.memory_space<vmem>>, %arg15: memref<1x120xf32, #tpu.memory_space<vmem>>, %arg16: memref<120x84xf32, #tpu.memory_space<vmem>>, %arg17: memref<1x84xf32, #tpu.memory_space<vmem>>, %arg18: memref<84x128xf32, #tpu.memory_space<vmem>>, %arg19: memref<1x128xf32, #tpu.memory_space<vmem>>, %arg20: memref<2x128xf32, #tpu.memory_space<vmem>>, %arg21: memref<5x2x80xf32, #tpu.memory_space<vmem>>) attributes {dimension_semantics = [#tpu.dimension_semantics<parallel>], iteration_bounds = array<i64: 1>, scalar_prefetch = 0 : i64, scratch_operands = 1 : i64, tpu.core_type = #tpu.core_type<tc>, window_params = [{transform_indices = @transform_0, window_bounds = array<i64: 2, 32, 32>}, {pipeline_mode = #tpu.pipeline_mode<synchronous>, transform_indices = @transform_1, window_bounds = array<i64: 5, 32, 168>}, {pipeline_mode = #tpu.pipeline_mode<synchronous>, transform_indices = @transform_2, window_bounds = array<i64: 1, 84>}, {pipeline_mode = #tpu.pipeline_mode<synchronous>, transform_indices = @transform_3, window_bounds = array<i64: 14, 28>}, {pipeline_mode = #tpu.pipeline_mode<synchronous>, transform_indices = @transform_4, window_bounds = array<i64: 14, 28>}, {pipeline_mode = #tpu.pipeline_mode<synchronous>, transform_indices = @transform_5, window_bounds = array<i64: 168, 84>}, {pipeline_mode = #tpu.pipeline_mode<synchronous>, transform_indices = @transform_6, window_bounds = array<i64: 168, 84>}, {pipeline_mode = #tpu.pipeline_mode<synchronous>, transform_indices = @transform_7, window_bounds = array<i64: 5, 84, 160>}, {pipeline_mode = #tpu.pipeline_mode<synchronous>, transform_indices = @transform_8, window_bounds = array<i64: 1, 80>}, {pipeline_mode = #tpu.pipeline_mode<synchronous>, transform_indices = @transform_9, window_bounds = array<i64: 5, 10>}, {pipeline_mode = #tpu.pipeline_mode<synchronous>, transform_indices = @transform_10, window_bounds = array<i64: 5, 10>}, {pipeline_mode = #tpu.pipeline_mode<synchronous>, transform_indices = @transform_11, window_bounds = array<i64: 160, 80>}, {pipeline_mode = #tpu.pipeline_mode<synchronous>, transform_indices = @transform_12, window_bounds = array<i64: 160, 80>}, {pipeline_mode = #tpu.pipeline_mode<synchronous>, transform_indices = @transform_13, window_bounds = array<i64: 5, 80, 120>}, {pipeline_mode = #tpu.pipeline_mode<synchronous>, transform_indices = @transform_14, window_bounds = array<i64: 1, 120>}, {pipeline_mode = #tpu.pipeline_mode<synchronous>, transform_indices = @transform_15, window_bounds = array<i64: 120, 84>}, {pipeline_mode = #tpu.pipeline_mode<synchronous>, transform_indices = @transform_16, window_bounds = array<i64: 1, 84>}, {pipeline_mode = #tpu.pipeline_mode<synchronous>, transform_indices = @transform_17, window_bounds = array<i64: 84, 128>}, {pipeline_mode = #tpu.pipeline_mode<synchronous>, transform_indices = @transform_18, window_bounds = array<i64: 1, 128>}, {transform_indices = @transform_19, window_bounds = array<i64: 2, 128>}]} {
    %c0_i32 = arith.constant 0 : i32
    %c2_i32 = arith.constant 2 : i32
    %0 = arith.addi %c0_i32, %c2_i32 : i32
    %c1_i32 = arith.constant 1 : i32
    scf.for %arg22 = %c0_i32 to %0 step %c1_i32  : i32 {
      %48 = arith.index_cast %arg22 : i32 to index
      %c0_46 = arith.constant 0 : index
      %c0_47 = arith.constant 0 : index
      %49 = vector.load %arg1[%48, %c0_46, %c0_47] : memref<2x32x32xf32, #tpu.memory_space<vmem>>, vector<1x32x32xf32>
      %50 = vector.shape_cast %49 : vector<1x32x32xf32> to vector<32x32xf32>
      %51 = vector.extract_strided_slice %50 {offsets = [0, 0], sizes = [28, 32], strides = [1, 1]} : vector<32x32xf32> to vector<28x32xf32>
      %c0_48 = arith.constant 0 : index
      %c0_49 = arith.constant 0 : index
      %c0_50 = arith.constant 0 : index
      %52 = vector.load %arg2[%c0_48, %c0_49, %c0_50] : memref<5x32x168xf32, #tpu.memory_space<vmem>>, vector<1x32x168xf32>
      %53 = vector.shape_cast %52 : vector<1x32x168xf32> to vector<32x168xf32>
      %cst_51 = arith.constant dense<0.000000e+00> : vector<28x168xf32>
      %54 = tpu.matmul %51, %53, %cst_51 {dimension_numbers = #tpu.dot_dimension_numbers<[1], [0], [0], [1], [0, 0, 1, 1], [], []>} : vector<28x32xf32>, vector<32x168xf32>, vector<28x168xf32> -> vector<28x168xf32>
      %55 = vector.extract_strided_slice %50 {offsets = [1, 0], sizes = [28, 32], strides = [1, 1]} : vector<32x32xf32> to vector<28x32xf32>
      %c1_52 = arith.constant 1 : index
      %c0_53 = arith.constant 0 : index
      %c0_54 = arith.constant 0 : index
      %56 = vector.load %arg2[%c1_52, %c0_53, %c0_54] : memref<5x32x168xf32, #tpu.memory_space<vmem>>, vector<1x32x168xf32>
      %57 = vector.shape_cast %56 : vector<1x32x168xf32> to vector<32x168xf32>
      %cst_55 = arith.constant dense<0.000000e+00> : vector<28x168xf32>
      %58 = tpu.matmul %55, %57, %cst_55 {dimension_numbers = #tpu.dot_dimension_numbers<[1], [0], [0], [1], [0, 0, 1, 1], [], []>} : vector<28x32xf32>, vector<32x168xf32>, vector<28x168xf32> -> vector<28x168xf32>
      %59 = arith.addf %54, %58 : vector<28x168xf32>
      %60 = vector.extract_strided_slice %50 {offsets = [2, 0], sizes = [28, 32], strides = [1, 1]} : vector<32x32xf32> to vector<28x32xf32>
      %c2_56 = arith.constant 2 : index
      %c0_57 = arith.constant 0 : index
      %c0_58 = arith.constant 0 : index
      %61 = vector.load %arg2[%c2_56, %c0_57, %c0_58] : memref<5x32x168xf32, #tpu.memory_space<vmem>>, vector<1x32x168xf32>
      %62 = vector.shape_cast %61 : vector<1x32x168xf32> to vector<32x168xf32>
      %cst_59 = arith.constant dense<0.000000e+00> : vector<28x168xf32>
      %63 = tpu.matmul %60, %62, %cst_59 {dimension_numbers = #tpu.dot_dimension_numbers<[1], [0], [0], [1], [0, 0, 1, 1], [], []>} : vector<28x32xf32>, vector<32x168xf32>, vector<28x168xf32> -> vector<28x168xf32>
      %64 = arith.addf %59, %63 : vector<28x168xf32>
      %65 = vector.extract_strided_slice %50 {offsets = [3, 0], sizes = [28, 32], strides = [1, 1]} : vector<32x32xf32> to vector<28x32xf32>
      %c3_60 = arith.constant 3 : index
      %c0_61 = arith.constant 0 : index
      %c0_62 = arith.constant 0 : index
      %66 = vector.load %arg2[%c3_60, %c0_61, %c0_62] : memref<5x32x168xf32, #tpu.memory_space<vmem>>, vector<1x32x168xf32>
      %67 = vector.shape_cast %66 : vector<1x32x168xf32> to vector<32x168xf32>
      %cst_63 = arith.constant dense<0.000000e+00> : vector<28x168xf32>
      %68 = tpu.matmul %65, %67, %cst_63 {dimension_numbers = #tpu.dot_dimension_numbers<[1], [0], [0], [1], [0, 0, 1, 1], [], []>} : vector<28x32xf32>, vector<32x168xf32>, vector<28x168xf32> -> vector<28x168xf32>
      %69 = arith.addf %64, %68 : vector<28x168xf32>
      %70 = vector.extract_strided_slice %50 {offsets = [4, 0], sizes = [28, 32], strides = [1, 1]} : vector<32x32xf32> to vector<28x32xf32>
      %c4_64 = arith.constant 4 : index
      %c0_65 = arith.constant 0 : index
      %c0_66 = arith.constant 0 : index
      %71 = vector.load %arg2[%c4_64, %c0_65, %c0_66] : memref<5x32x168xf32, #tpu.memory_space<vmem>>, vector<1x32x168xf32>
      %72 = vector.shape_cast %71 : vector<1x32x168xf32> to vector<32x168xf32>
      %cst_67 = arith.constant dense<0.000000e+00> : vector<28x168xf32>
      %73 = tpu.matmul %70, %72, %cst_67 {dimension_numbers = #tpu.dot_dimension_numbers<[1], [0], [0], [1], [0, 0, 1, 1], [], []>} : vector<28x32xf32>, vector<32x168xf32>, vector<28x168xf32> -> vector<28x168xf32>
      %74 = arith.addf %69, %73 : vector<28x168xf32>
      %c0_68 = arith.constant 0 : index
      %c0_69 = arith.constant 0 : index
      %75 = vector.load %arg4[%c0_68, %c0_69] : memref<14x28xf32, #tpu.memory_space<vmem>>, vector<14x28xf32>
      %cst_70 = arith.constant dense<0.000000e+00> : vector<14x168xf32>
      %76 = tpu.matmul %75, %74, %cst_70 {dimension_numbers = #tpu.dot_dimension_numbers<[1], [0], [0], [1], [0, 0, 1, 1], [], []>} : vector<14x28xf32>, vector<28x168xf32>, vector<14x168xf32> -> vector<14x168xf32>
      %c0_71 = arith.constant 0 : index
      %c0_72 = arith.constant 0 : index
      %77 = vector.load %arg5[%c0_71, %c0_72] : memref<14x28xf32, #tpu.memory_space<vmem>>, vector<14x28xf32>
      %cst_73 = arith.constant dense<0.000000e+00> : vector<14x168xf32>
      %78 = tpu.matmul %77, %74, %cst_73 {dimension_numbers = #tpu.dot_dimension_numbers<[1], [0], [0], [1], [0, 0, 1, 1], [], []>} : vector<14x28xf32>, vector<28x168xf32>, vector<14x168xf32> -> vector<14x168xf32>
      %79 = arith.maximumf %76, %78 : vector<14x168xf32>
      %c0_74 = arith.constant 0 : index
      %c0_75 = arith.constant 0 : index
      %80 = vector.load %arg6[%c0_74, %c0_75] : memref<168x84xf32, #tpu.memory_space<vmem>>, vector<168x84xf32>
      %cst_76 = arith.constant dense<0.000000e+00> : vector<14x84xf32>
      %81 = tpu.matmul %79, %80, %cst_76 {dimension_numbers = #tpu.dot_dimension_numbers<[1], [0], [0], [1], [0, 0, 1, 1], [], []>} : vector<14x168xf32>, vector<168x84xf32>, vector<14x84xf32> -> vector<14x84xf32>
      %c0_77 = arith.constant 0 : index
      %c0_78 = arith.constant 0 : index
      %82 = vector.load %arg7[%c0_77, %c0_78] : memref<168x84xf32, #tpu.memory_space<vmem>>, vector<168x84xf32>
      %cst_79 = arith.constant dense<0.000000e+00> : vector<14x84xf32>
      %83 = tpu.matmul %79, %82, %cst_79 {dimension_numbers = #tpu.dot_dimension_numbers<[1], [0], [0], [1], [0, 0, 1, 1], [], []>} : vector<14x168xf32>, vector<168x84xf32>, vector<14x84xf32> -> vector<14x84xf32>
      %84 = arith.maximumf %81, %83 : vector<14x84xf32>
      %c0_80 = arith.constant 0 : index
      %c0_81 = arith.constant 0 : index
      %85 = vector.load %arg3[%c0_80, %c0_81] : memref<1x84xf32, #tpu.memory_space<vmem>>, vector<1x84xf32>
      %86 = vector.broadcast %85 : vector<1x84xf32> to vector<14x84xf32>
      %87 = arith.addf %84, %86 : vector<14x84xf32>
      %cst_82 = arith.constant 0.000000e+00 : f32
      %88 = vector.broadcast %cst_82 : f32 to vector<14x84xf32>
      %89 = arith.maximumf %87, %88 : vector<14x84xf32>
      %90 = vector.extract_strided_slice %89 {offsets = [0, 0], sizes = [10, 84], strides = [1, 1]} : vector<14x84xf32> to vector<10x84xf32>
      %c0_83 = arith.constant 0 : index
      %c0_84 = arith.constant 0 : index
      %c0_85 = arith.constant 0 : index
      %91 = vector.load %arg8[%c0_83, %c0_84, %c0_85] : memref<5x84x160xf32, #tpu.memory_space<vmem>>, vector<1x84x160xf32>
      %92 = vector.shape_cast %91 : vector<1x84x160xf32> to vector<84x160xf32>
      %cst_86 = arith.constant dense<0.000000e+00> : vector<10x160xf32>
      %93 = tpu.matmul %90, %92, %cst_86 {dimension_numbers = #tpu.dot_dimension_numbers<[1], [0], [0], [1], [0, 0, 1, 1], [], []>} : vector<10x84xf32>, vector<84x160xf32>, vector<10x160xf32> -> vector<10x160xf32>
      %94 = vector.extract_strided_slice %89 {offsets = [1, 0], sizes = [10, 84], strides = [1, 1]} : vector<14x84xf32> to vector<10x84xf32>
      %c1_87 = arith.constant 1 : index
      %c0_88 = arith.constant 0 : index
      %c0_89 = arith.constant 0 : index
      %95 = vector.load %arg8[%c1_87, %c0_88, %c0_89] : memref<5x84x160xf32, #tpu.memory_space<vmem>>, vector<1x84x160xf32>
      %96 = vector.shape_cast %95 : vector<1x84x160xf32> to vector<84x160xf32>
      %cst_90 = arith.constant dense<0.000000e+00> : vector<10x160xf32>
      %97 = tpu.matmul %94, %96, %cst_90 {dimension_numbers = #tpu.dot_dimension_numbers<[1], [0], [0], [1], [0, 0, 1, 1], [], []>} : vector<10x84xf32>, vector<84x160xf32>, vector<10x160xf32> -> vector<10x160xf32>
      %98 = arith.addf %93, %97 : vector<10x160xf32>
      %99 = vector.extract_strided_slice %89 {offsets = [2, 0], sizes = [10, 84], strides = [1, 1]} : vector<14x84xf32> to vector<10x84xf32>
      %c2_91 = arith.constant 2 : index
      %c0_92 = arith.constant 0 : index
      %c0_93 = arith.constant 0 : index
      %100 = vector.load %arg8[%c2_91, %c0_92, %c0_93] : memref<5x84x160xf32, #tpu.memory_space<vmem>>, vector<1x84x160xf32>
      %101 = vector.shape_cast %100 : vector<1x84x160xf32> to vector<84x160xf32>
      %cst_94 = arith.constant dense<0.000000e+00> : vector<10x160xf32>
      %102 = tpu.matmul %99, %101, %cst_94 {dimension_numbers = #tpu.dot_dimension_numbers<[1], [0], [0], [1], [0, 0, 1, 1], [], []>} : vector<10x84xf32>, vector<84x160xf32>, vector<10x160xf32> -> vector<10x160xf32>
      %103 = arith.addf %98, %102 : vector<10x160xf32>
      %104 = vector.extract_strided_slice %89 {offsets = [3, 0], sizes = [10, 84], strides = [1, 1]} : vector<14x84xf32> to vector<10x84xf32>
      %c3_95 = arith.constant 3 : index
      %c0_96 = arith.constant 0 : index
      %c0_97 = arith.constant 0 : index
      %105 = vector.load %arg8[%c3_95, %c0_96, %c0_97] : memref<5x84x160xf32, #tpu.memory_space<vmem>>, vector<1x84x160xf32>
      %106 = vector.shape_cast %105 : vector<1x84x160xf32> to vector<84x160xf32>
      %cst_98 = arith.constant dense<0.000000e+00> : vector<10x160xf32>
      %107 = tpu.matmul %104, %106, %cst_98 {dimension_numbers = #tpu.dot_dimension_numbers<[1], [0], [0], [1], [0, 0, 1, 1], [], []>} : vector<10x84xf32>, vector<84x160xf32>, vector<10x160xf32> -> vector<10x160xf32>
      %108 = arith.addf %103, %107 : vector<10x160xf32>
      %109 = vector.extract_strided_slice %89 {offsets = [4, 0], sizes = [10, 84], strides = [1, 1]} : vector<14x84xf32> to vector<10x84xf32>
      %c4_99 = arith.constant 4 : index
      %c0_100 = arith.constant 0 : index
      %c0_101 = arith.constant 0 : index
      %110 = vector.load %arg8[%c4_99, %c0_100, %c0_101] : memref<5x84x160xf32, #tpu.memory_space<vmem>>, vector<1x84x160xf32>
      %111 = vector.shape_cast %110 : vector<1x84x160xf32> to vector<84x160xf32>
      %cst_102 = arith.constant dense<0.000000e+00> : vector<10x160xf32>
      %112 = tpu.matmul %109, %111, %cst_102 {dimension_numbers = #tpu.dot_dimension_numbers<[1], [0], [0], [1], [0, 0, 1, 1], [], []>} : vector<10x84xf32>, vector<84x160xf32>, vector<10x160xf32> -> vector<10x160xf32>
      %113 = arith.addf %108, %112 : vector<10x160xf32>
      %c0_103 = arith.constant 0 : index
      %c0_104 = arith.constant 0 : index
      %114 = vector.load %arg10[%c0_103, %c0_104] : memref<5x10xf32, #tpu.memory_space<vmem>>, vector<5x10xf32>
      %cst_105 = arith.constant dense<0.000000e+00> : vector<5x160xf32>
      %115 = tpu.matmul %114, %113, %cst_105 {dimension_numbers = #tpu.dot_dimension_numbers<[1], [0], [0], [1], [0, 0, 1, 1], [], []>} : vector<5x10xf32>, vector<10x160xf32>, vector<5x160xf32> -> vector<5x160xf32>
      %c0_106 = arith.constant 0 : index
      %c0_107 = arith.constant 0 : index
      %116 = vector.load %arg11[%c0_106, %c0_107] : memref<5x10xf32, #tpu.memory_space<vmem>>, vector<5x10xf32>
      %cst_108 = arith.constant dense<0.000000e+00> : vector<5x160xf32>
      %117 = tpu.matmul %116, %113, %cst_108 {dimension_numbers = #tpu.dot_dimension_numbers<[1], [0], [0], [1], [0, 0, 1, 1], [], []>} : vector<5x10xf32>, vector<10x160xf32>, vector<5x160xf32> -> vector<5x160xf32>
      %118 = arith.maximumf %115, %117 : vector<5x160xf32>
      %c0_109 = arith.constant 0 : index
      %c0_110 = arith.constant 0 : index
      %119 = vector.load %arg12[%c0_109, %c0_110] : memref<160x80xf32, #tpu.memory_space<vmem>>, vector<160x80xf32>
      %cst_111 = arith.constant dense<0.000000e+00> : vector<5x80xf32>
      %120 = tpu.matmul %118, %119, %cst_111 {dimension_numbers = #tpu.dot_dimension_numbers<[1], [0], [0], [1], [0, 0, 1, 1], [], []>} : vector<5x160xf32>, vector<160x80xf32>, vector<5x80xf32> -> vector<5x80xf32>
      %c0_112 = arith.constant 0 : index
      %c0_113 = arith.constant 0 : index
      %121 = vector.load %arg13[%c0_112, %c0_113] : memref<160x80xf32, #tpu.memory_space<vmem>>, vector<160x80xf32>
      %cst_114 = arith.constant dense<0.000000e+00> : vector<5x80xf32>
      %122 = tpu.matmul %118, %121, %cst_114 {dimension_numbers = #tpu.dot_dimension_numbers<[1], [0], [0], [1], [0, 0, 1, 1], [], []>} : vector<5x160xf32>, vector<160x80xf32>, vector<5x80xf32> -> vector<5x80xf32>
      %123 = arith.maximumf %120, %122 : vector<5x80xf32>
      %c0_115 = arith.constant 0 : index
      %c0_116 = arith.constant 0 : index
      %124 = vector.load %arg9[%c0_115, %c0_116] : memref<1x80xf32, #tpu.memory_space<vmem>>, vector<1x80xf32>
      %125 = vector.broadcast %124 : vector<1x80xf32> to vector<5x80xf32>
      %126 = arith.addf %123, %125 : vector<5x80xf32>
      %cst_117 = arith.constant 0.000000e+00 : f32
      %127 = vector.broadcast %cst_117 : f32 to vector<5x80xf32>
      %128 = arith.maximumf %126, %127 : vector<5x80xf32>
      %129 = vector.extract_strided_slice %128 {offsets = [0, 0], sizes = [1, 80], strides = [1, 1]} : vector<5x80xf32> to vector<1x80xf32>
      %c0_118 = arith.constant 0 : index
      %130 = arith.index_cast %arg22 : i32 to index
      %c0_119 = arith.constant 0 : index
      %131 = vector.load %arg21[%c0_118, %130, %c0_119] : memref<5x2x80xf32, #tpu.memory_space<vmem>>, vector<1x1x80xf32>
      %132 = vector.shape_cast %131 : vector<1x1x80xf32> to vector<1x80xf32>
      %133 = vector.shape_cast %129 : vector<1x80xf32> to vector<1x1x80xf32>
      tpu.vector_store %arg21[%c0_118, %130, %c0_119], %133 {strides = array<i32>} : memref<5x2x80xf32, #tpu.memory_space<vmem>>, vector<1x1x80xf32>,
      %134 = vector.extract_strided_slice %128 {offsets = [1, 0], sizes = [1, 80], strides = [1, 1]} : vector<5x80xf32> to vector<1x80xf32>
      %c1_120 = arith.constant 1 : index
      %135 = arith.index_cast %arg22 : i32 to index
      %c0_121 = arith.constant 0 : index
      %136 = vector.load %arg21[%c1_120, %135, %c0_121] : memref<5x2x80xf32, #tpu.memory_space<vmem>>, vector<1x1x80xf32>
      %137 = vector.shape_cast %136 : vector<1x1x80xf32> to vector<1x80xf32>
      %138 = vector.shape_cast %134 : vector<1x80xf32> to vector<1x1x80xf32>
      tpu.vector_store %arg21[%c1_120, %135, %c0_121], %138 {strides = array<i32>} : memref<5x2x80xf32, #tpu.memory_space<vmem>>, vector<1x1x80xf32>,
      %139 = vector.extract_strided_slice %128 {offsets = [2, 0], sizes = [1, 80], strides = [1, 1]} : vector<5x80xf32> to vector<1x80xf32>
      %c2_122 = arith.constant 2 : index
      %140 = arith.index_cast %arg22 : i32 to index
      %c0_123 = arith.constant 0 : index
      %141 = vector.load %arg21[%c2_122, %140, %c0_123] : memref<5x2x80xf32, #tpu.memory_space<vmem>>, vector<1x1x80xf32>
      %142 = vector.shape_cast %141 : vector<1x1x80xf32> to vector<1x80xf32>
      %143 = vector.shape_cast %139 : vector<1x80xf32> to vector<1x1x80xf32>
      tpu.vector_store %arg21[%c2_122, %140, %c0_123], %143 {strides = array<i32>} : memref<5x2x80xf32, #tpu.memory_space<vmem>>, vector<1x1x80xf32>,
      %144 = vector.extract_strided_slice %128 {offsets = [3, 0], sizes = [1, 80], strides = [1, 1]} : vector<5x80xf32> to vector<1x80xf32>
      %c3_124 = arith.constant 3 : index
      %145 = arith.index_cast %arg22 : i32 to index
      %c0_125 = arith.constant 0 : index
      %146 = vector.load %arg21[%c3_124, %145, %c0_125] : memref<5x2x80xf32, #tpu.memory_space<vmem>>, vector<1x1x80xf32>
      %147 = vector.shape_cast %146 : vector<1x1x80xf32> to vector<1x80xf32>
      %148 = vector.shape_cast %144 : vector<1x80xf32> to vector<1x1x80xf32>
      tpu.vector_store %arg21[%c3_124, %145, %c0_125], %148 {strides = array<i32>} : memref<5x2x80xf32, #tpu.memory_space<vmem>>, vector<1x1x80xf32>,
      %149 = vector.extract_strided_slice %128 {offsets = [4, 0], sizes = [1, 80], strides = [1, 1]} : vector<5x80xf32> to vector<1x80xf32>
      %c4_126 = arith.constant 4 : index
      %150 = arith.index_cast %arg22 : i32 to index
      %c0_127 = arith.constant 0 : index
      %151 = vector.load %arg21[%c4_126, %150, %c0_127] : memref<5x2x80xf32, #tpu.memory_space<vmem>>, vector<1x1x80xf32>
      %152 = vector.shape_cast %151 : vector<1x1x80xf32> to vector<1x80xf32>
      %153 = vector.shape_cast %149 : vector<1x80xf32> to vector<1x1x80xf32>
      tpu.vector_store %arg21[%c4_126, %150, %c0_127], %153 {strides = array<i32>} : memref<5x2x80xf32, #tpu.memory_space<vmem>>, vector<1x1x80xf32>,
    }
    %c2_i32_0 = arith.constant 2 : i32
    %c0 = arith.constant 0 : index
    %c0_1 = arith.constant 0 : index
    %c0_2 = arith.constant 0 : index
    %1 = vector.load %arg21[%c0, %c0_1, %c0_2] : memref<5x2x80xf32, #tpu.memory_space<vmem>>, vector<1x2x80xf32>
    %2 = vector.shape_cast %1 : vector<1x2x80xf32> to vector<2x80xf32>
    %c0_3 = arith.constant 0 : index
    %c0_4 = arith.constant 0 : index
    %c0_5 = arith.constant 0 : index
    %3 = vector.load %arg14[%c0_3, %c0_4, %c0_5] : memref<5x80x120xf32, #tpu.memory_space<vmem>>, vector<1x80x120xf32>
    %4 = vector.shape_cast %3 : vector<1x80x120xf32> to vector<80x120xf32>
    %cst = arith.constant dense<0.000000e+00> : vector<2x120xf32>
    %5 = tpu.matmul %2, %4, %cst {dimension_numbers = #tpu.dot_dimension_numbers<[1], [0], [0], [1], [0, 0, 1, 1], [], []>} : vector<2x80xf32>, vector<80x120xf32>, vector<2x120xf32> -> vector<2x120xf32>
    %c1 = arith.constant 1 : index
    %c0_6 = arith.constant 0 : index
    %c0_7 = arith.constant 0 : index
    %6 = vector.load %arg21[%c1, %c0_6, %c0_7] : memref<5x2x80xf32, #tpu.memory_space<vmem>>, vector<1x2x80xf32>
    %7 = vector.shape_cast %6 : vector<1x2x80xf32> to vector<2x80xf32>
    %c1_8 = arith.constant 1 : index
    %c0_9 = arith.constant 0 : index
    %c0_10 = arith.constant 0 : index
    %8 = vector.load %arg14[%c1_8, %c0_9, %c0_10] : memref<5x80x120xf32, #tpu.memory_space<vmem>>, vector<1x80x120xf32>
    %9 = vector.shape_cast %8 : vector<1x80x120xf32> to vector<80x120xf32>
    %cst_11 = arith.constant dense<0.000000e+00> : vector<2x120xf32>
    %10 = tpu.matmul %7, %9, %cst_11 {dimension_numbers = #tpu.dot_dimension_numbers<[1], [0], [0], [1], [0, 0, 1, 1], [], []>} : vector<2x80xf32>, vector<80x120xf32>, vector<2x120xf32> -> vector<2x120xf32>
    %11 = arith.addf %5, %10 : vector<2x120xf32>
    %c2 = arith.constant 2 : index
    %c0_12 = arith.constant 0 : index
    %c0_13 = arith.constant 0 : index
    %12 = vector.load %arg21[%c2, %c0_12, %c0_13] : memref<5x2x80xf32, #tpu.memory_space<vmem>>, vector<1x2x80xf32>
    %13 = vector.shape_cast %12 : vector<1x2x80xf32> to vector<2x80xf32>
    %c2_14 = arith.constant 2 : index
    %c0_15 = arith.constant 0 : index
    %c0_16 = arith.constant 0 : index
    %14 = vector.load %arg14[%c2_14, %c0_15, %c0_16] : memref<5x80x120xf32, #tpu.memory_space<vmem>>, vector<1x80x120xf32>
    %15 = vector.shape_cast %14 : vector<1x80x120xf32> to vector<80x120xf32>
    %cst_17 = arith.constant dense<0.000000e+00> : vector<2x120xf32>
    %16 = tpu.matmul %13, %15, %cst_17 {dimension_numbers = #tpu.dot_dimension_numbers<[1], [0], [0], [1], [0, 0, 1, 1], [], []>} : vector<2x80xf32>, vector<80x120xf32>, vector<2x120xf32> -> vector<2x120xf32>
    %17 = arith.addf %11, %16 : vector<2x120xf32>
    %c3 = arith.constant 3 : index
    %c0_18 = arith.constant 0 : index
    %c0_19 = arith.constant 0 : index
    %18 = vector.load %arg21[%c3, %c0_18, %c0_19] : memref<5x2x80xf32, #tpu.memory_space<vmem>>, vector<1x2x80xf32>
    %19 = vector.shape_cast %18 : vector<1x2x80xf32> to vector<2x80xf32>
    %c3_20 = arith.constant 3 : index
    %c0_21 = arith.constant 0 : index
    %c0_22 = arith.constant 0 : index
    %20 = vector.load %arg14[%c3_20, %c0_21, %c0_22] : memref<5x80x120xf32, #tpu.memory_space<vmem>>, vector<1x80x120xf32>
    %21 = vector.shape_cast %20 : vector<1x80x120xf32> to vector<80x120xf32>
    %cst_23 = arith.constant dense<0.000000e+00> : vector<2x120xf32>
    %22 = tpu.matmul %19, %21, %cst_23 {dimension_numbers = #tpu.dot_dimension_numbers<[1], [0], [0], [1], [0, 0, 1, 1], [], []>} : vector<2x80xf32>, vector<80x120xf32>, vector<2x120xf32> -> vector<2x120xf32>
    %23 = arith.addf %17, %22 : vector<2x120xf32>
    %c4 = arith.constant 4 : index
    %c0_24 = arith.constant 0 : index
    %c0_25 = arith.constant 0 : index
    %24 = vector.load %arg21[%c4, %c0_24, %c0_25] : memref<5x2x80xf32, #tpu.memory_space<vmem>>, vector<1x2x80xf32>
    %25 = vector.shape_cast %24 : vector<1x2x80xf32> to vector<2x80xf32>
    %c4_26 = arith.constant 4 : index
    %c0_27 = arith.constant 0 : index
    %c0_28 = arith.constant 0 : index
    %26 = vector.load %arg14[%c4_26, %c0_27, %c0_28] : memref<5x80x120xf32, #tpu.memory_space<vmem>>, vector<1x80x120xf32>
    %27 = vector.shape_cast %26 : vector<1x80x120xf32> to vector<80x120xf32>
    %cst_29 = arith.constant dense<0.000000e+00> : vector<2x120xf32>
    %28 = tpu.matmul %25, %27, %cst_29 {dimension_numbers = #tpu.dot_dimension_numbers<[1], [0], [0], [1], [0, 0, 1, 1], [], []>} : vector<2x80xf32>, vector<80x120xf32>, vector<2x120xf32> -> vector<2x120xf32>
    %29 = arith.addf %23, %28 : vector<2x120xf32>
    %c0_30 = arith.constant 0 : index
    %c0_31 = arith.constant 0 : index
    %30 = vector.load %arg15[%c0_30, %c0_31] : memref<1x120xf32, #tpu.memory_space<vmem>>, vector<1x120xf32>
    %31 = vector.broadcast %30 : vector<1x120xf32> to vector<2x120xf32>
    %32 = arith.addf %29, %31 : vector<2x120xf32>
    %cst_32 = arith.constant 0.000000e+00 : f32
    %33 = vector.broadcast %cst_32 : f32 to vector<2x120xf32>
    %34 = arith.maximumf %32, %33 : vector<2x120xf32>
    %c0_33 = arith.constant 0 : index
    %c0_34 = arith.constant 0 : index
    %35 = vector.load %arg16[%c0_33, %c0_34] : memref<120x84xf32, #tpu.memory_space<vmem>>, vector<120x84xf32>
    %cst_35 = arith.constant dense<0.000000e+00> : vector<2x84xf32>
    %36 = tpu.matmul %34, %35, %cst_35 {dimension_numbers = #tpu.dot_dimension_numbers<[1], [0], [0], [1], [0, 0, 1, 1], [], []>} : vector<2x120xf32>, vector<120x84xf32>, vector<2x84xf32> -> vector<2x84xf32>
    %c0_36 = arith.constant 0 : index
    %c0_37 = arith.constant 0 : index
    %37 = vector.load %arg17[%c0_36, %c0_37] : memref<1x84xf32, #tpu.memory_space<vmem>>, vector<1x84xf32>
    %38 = vector.broadcast %37 : vector<1x84xf32> to vector<2x84xf32>
    %39 = arith.addf %36, %38 : vector<2x84xf32>
    %cst_38 = arith.constant 0.000000e+00 : f32
    %40 = vector.broadcast %cst_38 : f32 to vector<2x84xf32>
    %41 = arith.maximumf %39, %40 : vector<2x84xf32>
    %c0_39 = arith.constant 0 : index
    %c0_40 = arith.constant 0 : index
    %42 = vector.load %arg18[%c0_39, %c0_40] : memref<84x128xf32, #tpu.memory_space<vmem>>, vector<84x128xf32>
    %cst_41 = arith.constant dense<0.000000e+00> : vector<2x128xf32>
    %43 = tpu.matmul %41, %42, %cst_41 {dimension_numbers = #tpu.dot_dimension_numbers<[1], [0], [0], [1], [0, 0, 1, 1], [], []>} : vector<2x84xf32>, vector<84x128xf32>, vector<2x128xf32> -> vector<2x128xf32>
    %c0_42 = arith.constant 0 : index
    %c0_43 = arith.constant 0 : index
    %44 = vector.load %arg19[%c0_42, %c0_43] : memref<1x128xf32, #tpu.memory_space<vmem>>, vector<1x128xf32>
    %45 = vector.broadcast %44 : vector<1x128xf32> to vector<2x128xf32>
    %46 = arith.addf %43, %45 : vector<2x128xf32>
    %c0_44 = arith.constant 0 : index
    %c0_45 = arith.constant 0 : index
    %47 = vector.load %arg20[%c0_44, %c0_45] : memref<2x128xf32, #tpu.memory_space<vmem>>, vector<2x128xf32>
    tpu.vector_store %arg20[%c0_44, %c0_45], %46 {strides = array<i32>} : memref<2x128xf32, #tpu.memory_space<vmem>>, vector<2x128xf32>,
    return
  }
  func.func @transform_0(%arg0: i32) -> (i32, i32, i32) {
    %c0_i32 = arith.constant 0 : i32
    %c0_i32_0 = arith.constant 0 : i32
    %c0_i32_1 = arith.constant 0 : i32
    return %arg0, %c0_i32, %c0_i32_0 : i32, i32, i32
  }
  func.func @transform_1(%arg0: i32) -> (i32, i32, i32) {
    %c0_i32 = arith.constant 0 : i32
    %c0_i32_0 = arith.constant 0 : i32
    %c0_i32_1 = arith.constant 0 : i32
    %c0_i32_2 = arith.constant 0 : i32
    return %c0_i32, %c0_i32_0, %c0_i32_1 : i32, i32, i32
  }
  func.func @transform_2(%arg0: i32) -> (i32, i32) {
    %c0_i32 = arith.constant 0 : i32
    %c0_i32_0 = arith.constant 0 : i32
    %c0_i32_1 = arith.constant 0 : i32
    return %c0_i32, %c0_i32_0 : i32, i32
  }
  func.func @transform_3(%arg0: i32) -> (i32, i32) {
    %c0_i32 = arith.constant 0 : i32
    %c0_i32_0 = arith.constant 0 : i32
    %c0_i32_1 = arith.constant 0 : i32
    return %c0_i32, %c0_i32_0 : i32, i32
  }
  func.func @transform_4(%arg0: i32) -> (i32, i32) {
    %c0_i32 = arith.constant 0 : i32
    %c0_i32_0 = arith.constant 0 : i32
    %c0_i32_1 = arith.constant 0 : i32
    return %c0_i32, %c0_i32_0 : i32, i32
  }
  func.func @transform_5(%arg0: i32) -> (i32, i32) {
    %c0_i32 = arith.constant 0 : i32
    %c0_i32_0 = arith.constant 0 : i32
    %c0_i32_1 = arith.constant 0 : i32
    return %c0_i32, %c0_i32_0 : i32, i32
  }
  func.func @transform_6(%arg0: i32) -> (i32, i32) {
    %c0_i32 = arith.constant 0 : i32
    %c0_i32_0 = arith.constant 0 : i32
    %c0_i32_1 = arith.constant 0 : i32
    return %c0_i32, %c0_i32_0 : i32, i32
  }
  func.func @transform_7(%arg0: i32) -> (i32, i32, i32) {
    %c0_i32 = arith.constant 0 : i32
    %c0_i32_0 = arith.constant 0 : i32
    %c0_i32_1 = arith.constant 0 : i32
    %c0_i32_2 = arith.constant 0 : i32
    return %c0_i32, %c0_i32_0, %c0_i32_1 : i32, i32, i32
  }
  func.func @transform_8(%arg0: i32) -> (i32, i32) {
    %c0_i32 = arith.constant 0 : i32
    %c0_i32_0 = arith.constant 0 : i32
    %c0_i32_1 = arith.constant 0 : i32
    return %c0_i32, %c0_i32_0 : i32, i32
  }
  func.func @transform_9(%arg0: i32) -> (i32, i32) {
    %c0_i32 = arith.constant 0 : i32
    %c0_i32_0 = arith.constant 0 : i32
    %c0_i32_1 = arith.constant 0 : i32
    return %c0_i32, %c0_i32_0 : i32, i32
  }
  func.func @transform_10(%arg0: i32) -> (i32, i32) {
    %c0_i32 = arith.constant 0 : i32
    %c0_i32_0 = arith.constant 0 : i32
    %c0_i32_1 = arith.constant 0 : i32
    return %c0_i32, %c0_i32_0 : i32, i32
  }
  func.func @transform_11(%arg0: i32) -> (i32, i32) {
    %c0_i32 = arith.constant 0 : i32
    %c0_i32_0 = arith.constant 0 : i32
    %c0_i32_1 = arith.constant 0 : i32
    return %c0_i32, %c0_i32_0 : i32, i32
  }
  func.func @transform_12(%arg0: i32) -> (i32, i32) {
    %c0_i32 = arith.constant 0 : i32
    %c0_i32_0 = arith.constant 0 : i32
    %c0_i32_1 = arith.constant 0 : i32
    return %c0_i32, %c0_i32_0 : i32, i32
  }
  func.func @transform_13(%arg0: i32) -> (i32, i32, i32) {
    %c0_i32 = arith.constant 0 : i32
    %c0_i32_0 = arith.constant 0 : i32
    %c0_i32_1 = arith.constant 0 : i32
    %c0_i32_2 = arith.constant 0 : i32
    return %c0_i32, %c0_i32_0, %c0_i32_1 : i32, i32, i32
  }
  func.func @transform_14(%arg0: i32) -> (i32, i32) {
    %c0_i32 = arith.constant 0 : i32
    %c0_i32_0 = arith.constant 0 : i32
    %c0_i32_1 = arith.constant 0 : i32
    return %c0_i32, %c0_i32_0 : i32, i32
  }
  func.func @transform_15(%arg0: i32) -> (i32, i32) {
    %c0_i32 = arith.constant 0 : i32
    %c0_i32_0 = arith.constant 0 : i32
    %c0_i32_1 = arith.constant 0 : i32
    return %c0_i32, %c0_i32_0 : i32, i32
  }
  func.func @transform_16(%arg0: i32) -> (i32, i32) {
    %c0_i32 = arith.constant 0 : i32
    %c0_i32_0 = arith.constant 0 : i32
    %c0_i32_1 = arith.constant 0 : i32
    return %c0_i32, %c0_i32_0 : i32, i32
  }
  func.func @transform_17(%arg0: i32) -> (i32, i32) {
    %c0_i32 = arith.constant 0 : i32
    %c0_i32_0 = arith.constant 0 : i32
    %c0_i32_1 = arith.constant 0 : i32
    return %c0_i32, %c0_i32_0 : i32, i32
  }
  func.func @transform_18(%arg0: i32) -> (i32, i32) {
    %c0_i32 = arith.constant 0 : i32
    %c0_i32_0 = arith.constant 0 : i32
    %c0_i32_1 = arith.constant 0 : i32
    return %c0_i32, %c0_i32_0 : i32, i32
  }
  func.func @transform_19(%arg0: i32) -> (i32, i32) {
    %c0_i32 = arith.constant 0 : i32
    %c0_i32_0 = arith.constant 0 : i32
    return %arg0, %c0_i32 : i32, i32
  }
}

</mosaic_0001>

<bundles_post_ra>
// kernel: lenet_forward.1
= control target key start
LH: loop header
LB: loop body
LE: loop exit
PB: predicated region body
PF: predicated region fallthrough
CT: control target
= control target key end

     0   :  { %s5035_s0 = inlined_call_operand.vmem [shape: f32[2,32,32], index: 0, kind: input, shape index: {}]   ;;  %s5036_s1 = inlined_call_operand.vmem [shape: f32[5,32,168], index: 1, kind: input, shape index: {}]   ;;  %s5037_s2 = inlined_call_operand.vmem [shape: f32[1,84], index: 2, kind: input, shape index: {}]   ;;  %s5038_s3 = inlined_call_operand.vmem [shape: f32[14,28], index: 3, kind: input, shape index: {}]   ;;  %s5039_s4 = inlined_call_operand.vmem [shape: f32[14,28], index: 4, kind: input, shape index: {}]   ;;  %s5040_s5 = inlined_call_operand.vmem [shape: f32[168,84], index: 5, kind: input, shape index: {}]   ;;  %s5041_s6 = inlined_call_operand.vmem [shape: f32[168,84], index: 6, kind: input, shape index: {}]   ;;  %s5042_s7 = inlined_call_operand.vmem [shape: f32[5,84,160], index: 7, kind: input, shape index: {}]   ;;  %s5043_s8 = inlined_call_operand.vmem [shape: f32[1,80], index: 8, kind: input, shape index: {}]   ;;  %s5044_s9 = inlined_call_operand.vmem [shape: f32[5,10], index: 9, kind: input, shape index: {}]   ;;  %s5045_s10 = inlined_call_operand.vmem [shape: f32[5,10], index: 10, kind: input, shape index: {}]   ;;  %s5046_s11 = inlined_call_operand.vmem [shape: f32[160,80], index: 11, kind: input, shape index: {}]   ;;  %s5047_s12 = inlined_call_operand.vmem [shape: f32[160,80], index: 12, kind: input, shape index: {}]   ;;  %s5048_s13 = inlined_call_operand.vmem [shape: f32[5,80,120], index: 13, kind: input, shape index: {}]   ;;  %s5049_s14 = inlined_call_operand.vmem [shape: f32[1,120], index: 14, kind: input, shape index: {}]   ;;  %s5050_s15 = inlined_call_operand.vmem [shape: f32[120,84], index: 15, kind: input, shape index: {}]   ;;  %s5051_s16 = inlined_call_operand.vmem [shape: f32[1,84], index: 16, kind: input, shape index: {}]   ;;  %s5052_s17 = inlined_call_operand.vmem [shape: f32[84,128], index: 17, kind: input, shape index: {}]   ;;  %s5053_s18 = inlined_call_operand.vmem [shape: f32[1,128], index: 18, kind: input, shape index: {}]   ;;  %s5054_s19 = inlined_call_operand.hbm [shape: f32[2,128], index: 19, kind: output, shape index: {}]  }
   0x1   :  { %5057 = sst [smem:[#allocation6_spill]] %s5035_s0 }
   0x2   :  { %5058 = sst [smem:[#allocation7_spill]] %s5036_s1 }
   0x3   :  { %5059 = sst [smem:[#allocation8_spill]] %s5037_s2 }
   0x4   :  { %5060 = sst [smem:[#allocation9_spill]] %s5038_s3 }
   0x5   :  { %24 = vsyncpa [#allocation4], 0  ;;  %s3770_s0 = smov 0  }
   0x6 LB: > { %s5061_s21 = sld [smem:[#allocation7_spill]]  ;;  %v3663_v7 = vmov 0.0   ;;  %s2671_s22 = sshll.u32 %s3661_s0, 5  ;;  %vm96_vm0 = vcmask 1046528   ;;  %vm104_vm1 = vcmask 261120   ;;  %vm552_vm2 = vcmask 1043456   ;;  %s3661_s0 = sphi %s3770_s0, %s68_s0  }
   0x7   : > { %177 = vmatprep.mubr.f32.mxu0 %v3663_v7  ;;  %744 = vmatprep.mubr.f32.mxu1 %v3663_v7  ;;  %s5062_s3 = sld [smem:[#allocation6_spill]]  ;;  %vm308_vm3 = vcmask 1045504   ;;  %vm430_vm4 = vcmask 1044480   ;;  %vm3664_vm5 = vmmov 1   ;;  %s5063_s27 = sld [smem:[#allocation9_spill]]  ;;  %vm667_vm7 = vcmask 228352  }
   0x8   : > { %vm3210_vm6 = vmpackc.low %vm552_vm2, %vm3664_vm5  ;;  %vm867_vm8 = vcmask 326656   ;;  %s5064_s23 = sld [smem:[#allocation8_spill]]  ;;  %vm1108_vm9 = vcmask 687104   ;;  %vm1639_vm10 = vcmask 1041408   ;;  %vm1635_vm12 = vcmask 80896   ;;  %s1987_s20 = scalar_lea.vmem [#allocation2], %s3661_s0 }
   0x9   : > { %vm3386_vm11 = vmpackc.low %vm1639_vm10, %vm3664_vm5  ;;  %vm1988_vm13 = vcmask 647168   ;;  %vm1992_vm14 = vcmask 648193   ;;  %vm1996_vm15 = vcmask 649218   ;;  %s68_s0 = sadd.s32 1, %s3661_s0  }
   0xa   : > { %p65_p0 = scmp.ge.s32.totalorder %s68_s0, 2  }
   0xb   :  { %vm2469_vm5 = vcmask (%p65_p0), 982016  }
   0xc   : > { %v2673_v0 = vld [vmem:[%s5061_s21 + $0x48] sm:$0xff]  ;;  %v2675_v1 = vld [vmem:[%s5061_s21 + $0x58] sm:$0xff]  ;;  %v2672_v2 = vld [vmem:[%s5061_s21 + $0x40] sm:$0xff] }
   0xd   : > { %v3165_v3 = vpack.c.bf16 %v2675_v1, %v2673_v0  ;;  %v2674_v4 = vld [vmem:[%s5061_s21 + $0x50] sm:$0xff]  ;;  %v2677_v5 = vld [vmem:[%s5061_s21 + $0x68] sm:$0xff]  ;;  %v2679_v6 = vld [vmem:[%s5061_s21 + $0x78] sm:$0xff]  ;;  %s70_s26 = scalar_lea.vmem %s5062_s3, %s2671_s22 }
   0xe   : > { %v3167_v8 = vpack.c.bf16 %v2674_v4, %v2672_v2  ;;  %v3169_v9 = vpack.c.bf16 %v2679_v6, %v2677_v5  ;;  %v2676_v10 = vld [vmem:[%s5061_s21 + $0x60] sm:$0xff]  ;;  %v2678_v11 = vld [vmem:[%s5061_s21 + $0x70] sm:$0xff]  ;;  %v76_v12 = vld [vmem:[%s5061_s21 + $0x8] sm:$0xff] }
   0xf   : > { %3166 = vmatprep.subr.bf16.mxu0 %v3165_v3  ;;  %v78_v13 = vld [vmem:[%s5061_s21 + $0x18] sm:$0xff]  ;;  %v3171_v14 = vpack.c.bf16 %v2678_v11, %v2676_v10  ;;  %v3811_v15 = vld [vmem:[%s70_s26] sm:$0xff]  ;;  %v3813_v16 = vld [vmem:[%s70_s26 + $0x8] sm:$0xff] }
  0x10   : > { %3168 = vmatpush1.bf16.msra.mxu0 %v3167_v8  ;;  %v97_v17 = vrot.slane %v3811_v15, 1  ;;  %v98_v18 = vrot.slane %v3813_v16, 1  ;;  %v3817_v19 = vld [vmem:[%s70_s26 + $0x10] sm:$0xff]  ;;  %v3173_v20 = vpack.c.bf16 %v78_v13, %v76_v12  ;;  %v75_v21 = vld [vmem:[%s5061_s21] sm:$0xff]  ;;  %v80_v23 = vld [vmem:[%s5061_s21 + $0x28] sm:$0xff]  ;;  %v553_v34 = vrot.slane %v3811_v15, 4 }
  0x11   : > { %3170 = vmatprep.subr.bf16.mxu0 %v3169_v9  ;;  %v77_v22 = vld [vmem:[%s5061_s21 + $0x10] sm:$0xff]  ;;  %v82_v24 = vld [vmem:[%s5061_s21 + $0x38] sm:$0xff]  ;;  %v100_v26 = vrot.slane %v3817_v19, 1  ;;  %v79_v30 = vld [vmem:[%s5061_s21 + $0x20] sm:$0xff]  ;;  %v554_v38 = vrot.slane %v3813_v16, 4  ;;  %v556_v40 = vrot.slane %v3817_v19, 4 }
  0x12   : > { %v99_v25 = vsel %vm96_vm0, %v97_v17, %v98_v18  ;;  %v3175_v27 = vpack.c.bf16 %v77_v22, %v75_v21  ;;  %v3833_v28 = vld [vmem:[%s70_s26 + $0x18] sm:$0xff]  ;;  %v3177_v29 = vpack.c.bf16 %v82_v24, %v80_v23  ;;  %v81_v31 = vld [vmem:[%s5061_s21 + $0x30] sm:$0xff]  ;;  %v2689_v32 = vld [vmem:[%s5061_s21 + $0x88] sm:$0xff]  ;;  %v309_v58 = vrot.slane %v3811_v15, 2 }
  0x13   : > { %v2691_v33 = vld [vmem:[%s5061_s21 + $0x98] sm:$0xff]  ;;  %v101_v35 = vsel %vm96_vm0, %v98_v18, %v100_v26  ;;  %v102_v36 = vrot.slane %v3833_v28, 1  ;;  %v3179_v37 = vpack.c.bf16 %v81_v31, %v79_v30  ;;  %v3855_v41 = vsel %vm552_vm2, %v553_v34, %v554_v38  ;;  %v2688_v46 = vld [vmem:[%s5061_s21 + $0x80] sm:$0xff]  ;;  %v2690_v47 = vld [vmem:[%s5061_s21 + $0x90] sm:$0xff] }
  0x14   : > { %3172 = vmatpush1.bf16.msra.mxu0 %v3171_v14  ;;  %v3181_v39 = vpack.c.bf16 %v2691_v33, %v2689_v32  ;;  %v558_v42 = vrot.slane %v3833_v28, 4  ;;  %v3860_v43 = vsel %vm552_vm2, %v554_v38, %v556_v40  ;;  %v2693_v48 = vld [vmem:[%s5061_s21 + $0xa8] sm:$0xff]  ;;  %v2695_v49 = vld [vmem:[%s5061_s21 + $0xb8] sm:$0xff]  ;;  %v3183_v50 = vpack.c.bf16 %v2690_v47, %v2688_v46  ;;  %v2692_v52 = vld [vmem:[%s5061_s21 + $0xa0] sm:$0xff] }
  0x15   : > { %3174 = vmatprep.subr.bf16.mxu0 %v3173_v20  ;;  %v103_v44 = vsel %vm96_vm0, %v100_v26, %v102_v36  ;;  %v3185_v51 = vpack.c.bf16 %v2695_v49, %v2693_v48  ;;  %v2694_v53 = vld [vmem:[%s5061_s21 + $0xb0] sm:$0xff]  ;;  %v2701_v54 = vld [vmem:[%s5061_s21 + $0xc8] sm:$0xff]  ;;  %v2703_v55 = vld [vmem:[%s5061_s21 + $0xd8] sm:$0xff]  ;;  %v310_v59 = vrot.slane %v3813_v16, 2  ;;  %v312_v1 = vrot.slane %v3817_v19, 2 }
  0x16   : > { %v3867_v45 = vsel %vm552_vm2, %v556_v40, %v558_v42  ;;  %v3187_v56 = vpack.c.bf16 %v2694_v53, %v2692_v52  ;;  %v3189_v57 = vpack.c.bf16 %v2703_v55, %v2701_v54  ;;  %v2700_v60 = vld [vmem:[%s5061_s21 + $0xc0] sm:$0xff]  ;;  %v2702_v61 = vld [vmem:[%s5061_s21 + $0xd0] sm:$0xff]  ;;  %v2705_v62 = vld [vmem:[%s5061_s21 + $0xe8] sm:$0xff]  ;;  %v314_v10 = vrot.slane %v3833_v28, 2 }
  0x17   : > { %2680 = vmatmul.mubr.msk.f32.vlgmr.msra.gmra.mrb[0].mxu0 %vm104_vm1, %v99_v25  ;;  %v2707_v63 = vld [vmem:[%s5061_s21 + $0xf8] sm:$0xff]  ;;  %v311_v0 = vsel %vm308_vm3, %v309_v58, %v310_v59  ;;  %v3191_v2 = vpack.c.bf16 %v2702_v61, %v2700_v60  ;;  %v2704_v4 = vld [vmem:[%s5061_s21 + $0xe0] sm:$0xff]  ;;  %v2706_v5 = vld [vmem:[%s5061_s21 + $0xf0] sm:$0xff]  ;;  %v313_v9 = vsel %vm308_vm3, %v310_v59, %v312_v1  ;;  %v431_v14 = vrot.slane %v3811_v15, 3 }
  0x18   : > { %183 = vmatprep.mubr.f32.mxu0 %v3663_v7  ;;  %3176 = vmatpush1.bf16.msra.mxu0 %v3175_v27  ;;  %v3193_v3 = vpack.c.bf16 %v2707_v63, %v2705_v62  ;;  %v2713_v6 = vld [vmem:[%s5061_s21 + $0x108] sm:$0xff]  ;;  %v2715_v8 = vld [vmem:[%s5061_s21 + $0x118] sm:$0xff]  ;;  %v3195_v11 = vpack.c.bf16 %v2706_v5, %v2704_v4  ;;  %v315_v13 = vsel %vm308_vm3, %v312_v1, %v314_v10  ;;  %v432_v17 = vrot.slane %v3813_v16, 3  ;;  %v2712_v18 = vld [vmem:[%s5061_s21 + $0x100] sm:$0xff] }
  0x19   : > { %3178 = vmatprep.subr.bf16.mxu0 %v3177_v29  ;;  %v3197_v12 = vpack.c.bf16 %v2715_v8, %v2713_v6  ;;  %v2714_v20 = vld [vmem:[%s5061_s21 + $0x110] sm:$0xff]  ;;  %v2717_v21 = vld [vmem:[%s5061_s21 + $0x128] sm:$0xff]  ;;  %v2719_v22 = vld [vmem:[%s5061_s21 + $0x138] sm:$0xff]  ;;  %v436_v29 = vrot.slane %v3833_v28, 3  ;;  %v3665_v48 = vmov 0.0|0.0  }
  0x1a   : > { %v3199_v23 = vpack.c.bf16 %v2714_v20, %v2712_v18  ;;  %v3201_v24 = vpack.c.bf16 %v2719_v22, %v2717_v21  ;;  %v2716_v25 = vld [vmem:[%s5061_s21 + $0x120] sm:$0xff]  ;;  %v2718_v26 = vld [vmem:[%s5061_s21 + $0x130] sm:$0xff]  ;;  %v851_v54 = vld [vmem:[%s5040_s5 + $0x28] sm:$0xff] }
  0x1b   : > { %2681 = vmatmul.mubr.msk.f32.gmra.mrb[2].mxu0 %vm104_vm1, %v101_v35  ;;  %v757_v46 = vld [vmem:[%s5039_s4] sm:$0xff]  ;;  %v848_v49 = vld [vmem:[%s5040_s5 + $0x10] sm:$0xff]  ;;  %v855_v60 = vld [vmem:[%s5040_s5 + $0x48] sm:$0xff] }
  0x1c   : > { %189 = vmatprep.mubr.f32.mxu0 %v3663_v7  ;;  %3180 = vmatpush1.bf16.msra.mxu0 %v3179_v37  ;;  %v850_v53 = vld [vmem:[%s5040_s5 + $0x20] sm:$0xff]  ;;  %v856_v62 = vld [vmem:[%s5040_s5 + $0x50] sm:$0xff]  ;;  %v857_v63 = vld [vmem:[%s5040_s5 + $0x58] sm:$0xff] }
  0x1d   : > { %3182 = vmatprep.subr.bf16.mxu0 %v3181_v39  ;;  %v3232_v55 = vpack.c.bf16 %v851_v54, %v850_v53  ;;  %v854_v59 = vld [vmem:[%s5040_s5 + $0x40] sm:$0xff]  ;;  %v860_v4 = vld [vmem:[%s5040_s5 + $0x70] sm:$0xff]  ;;  %v861_v5 = vld [vmem:[%s5040_s5 + $0x78] sm:$0xff] }
  0x1e   : > { %v3238_v61 = vpack.c.bf16 %v855_v60, %v854_v59  ;;  %v858_v1 = vld [vmem:[%s5040_s5 + $0x60] sm:$0xff]  ;;  %v3247_v6 = vpack.c.bf16 %v861_v5, %v860_v4  ;;  %v966_v53 = vld [vmem:[%s5041_s6 + $0x88] sm:$0xff]  ;;  %v2738_v59 = vld [vmem:[%s5042_s7 + $0xb8] sm:$0xff] }
  0x1f   : > { %2682 = vmatmul.mubr.msk.f32.gmra.mrb[4].mxu0 %vm104_vm1, %v103_v44  ;;  %v846_v44 = vld [vmem:[%s5040_s5] sm:$0xff]  ;;  %v2740_v60 = vld [vmem:[%s5042_s7 + $0xc8] sm:$0xff]  ;;  %v2741_v4 = vld [vmem:[%s5042_s7 + $0xd0] sm:$0xff] }
  0x20   : > { %195 = vmatprep.mubr.f32.mxu0 %v3663_v7  ;;  %v862_v8 = vld [vmem:[%s5040_s5 + $0x80] sm:$0xff] }
  0x21   : > { %v949_v22 = vld [vmem:[%s5041_s6] sm:$0xff] }
  0x22   : > { %v2743_v5 = vld [vmem:[%s5042_s7 + $0xe0] sm:$0xff] }
  0x23   : > { %2683 = vmatmul.mubr.msk.f32.gmra.mrb[6].mxu0 %vm104_vm1, %v102_v36 }
  0x24   : > { %274 = vmatprep.mubr.f32.mxu0 %v3663_v7 }
  0x27   : > { %2684 = vmatmul.mubr.msk.f32.vlgmr.msra.gmra.mrb[0].mxu0 %vm104_vm1, %v3811_v15  ;;  %v433_v15 = vsel %vm430_vm4, %v431_v14, %v432_v17  ;;  %v866_v14 = vld [vmem:[%s5040_s5 + $0xa0] sm:$0xff] }
  0x28   : > { %280 = vmatprep.mubr.f32.mxu0 %v3663_v7  ;;  %3184 = vmatpush1.bf16.msra.mxu0 %v3183_v50  ;;  %v849_v50 = vld [vmem:[%s5040_s5 + $0x18] sm:$0xff] }
  0x29   : > { %3186 = vmatprep.subr.bf16.mxu0 %v3185_v51  ;;  %v758_v51 = vld [vmem:[%s5039_s4 + $0x8] sm:$0x3f]  ;;  %v3229_v52 = vpack.c.bf16 %v849_v50, %v848_v49  ;;  %v963_v49 = vld [vmem:[%s5041_s6 + $0x70] sm:$0xff]  ;;  %v964_v50 = vld [vmem:[%s5041_s6 + $0x78] sm:$0xff] }
  0x2b   : > { %2685 = vmatmul.mubr.msk.f32.gmra.mrb[2].mxu0 %vm104_vm1, %v3813_v16  ;;  %v434_v16 = vrot.slane %v3817_v19, 3 }
  0x2c   : > { %286 = vmatprep.mubr.f32.mxu0 %v3663_v7  ;;  %3188 = vmatpush1.bf16.msra.mxu0 %v3187_v56  ;;  %v852_v56 = vld [vmem:[%s5040_s5 + $0x30] sm:$0xff] }
  0x2d   : > { %3190 = vmatprep.subr.bf16.mxu0 %v3189_v57  ;;  %v435_v27 = vsel %vm430_vm4, %v432_v17, %v434_v16  ;;  %v437_v30 = vsel %vm430_vm4, %v434_v16, %v436_v29  ;;  %v853_v57 = vld [vmem:[%s5040_s5 + $0x38] sm:$0xff] }
  0x2e   : > { %v3235_v58 = vpack.c.bf16 %v853_v57, %v852_v56  ;;  %v968_v56 = vld [vmem:[%s5041_s6 + $0x98] sm:$0xff] }
  0x2f   : > { %2686 = vmatmul.mubr.msk.f32.gmra.mrb[4].mxu0 %vm104_vm1, %v3817_v19  ;;  %v3203_v19 = vpack.c.bf16 %v2718_v26, %v2716_v25 }
  0x30   : > { %292 = vmatprep.mubr.f32.mxu0 %v3663_v7 }
  0x33   : > { %2687 = vmatmul.mubr.msk.f32.gmra.mrb[6].mxu0 %vm104_vm1, %v3833_v28 }
  0x34   : > { %388 = vmatprep.mubr.f32.mxu0 %v3663_v7 }
  0x37   : > { %2696 = vmatmul.mubr.msk.f32.vlgmr.msra.gmra.mrb[0].mxu0 %vm104_vm1, %v311_v0  ;;  %v3241_v0 = vpack.c.bf16 %v857_v63, %v856_v62  ;;  %v3285_v62 = vpack.c.bf16 %v2740_v60, %v2738_v59  ;;  %v2739_v63 = vld [vmem:[%s5042_s7 + $0xc0] sm:$0xff] }
  0x38   : > { %394 = vmatprep.mubr.f32.mxu0 %v3663_v7  ;;  %3192 = vmatpush1.bf16.msra.mxu0 %v3191_v2  ;;  %v859_v2 = vld [vmem:[%s5040_s5 + $0x68] sm:$0xff] }
  0x39   : > { %3194 = vmatprep.subr.bf16.mxu0 %v3193_v3  ;;  %v3244_v3 = vpack.c.bf16 %v859_v2, %v858_v1  ;;  %v2744_v1 = vld [vmem:[%s5042_s7 + $0xe8] sm:$0xff] }
  0x3b   : > { %2697 = vmatmul.mubr.msk.f32.gmra.mrb[2].mxu0 %vm104_vm1, %v313_v9  ;;  %v863_v9 = vld [vmem:[%s5040_s5 + $0x88] sm:$0xff] }
  0x3c   : > { %400 = vmatprep.mubr.f32.mxu0 %v3663_v7  ;;  %3196 = vmatpush1.bf16.msra.mxu0 %v3195_v11  ;;  %v864_v11 = vld [vmem:[%s5040_s5 + $0x90] sm:$0xff] }
  0x3d   : > { %3198 = vmatprep.subr.bf16.mxu0 %v3197_v12  ;;  %v865_v12 = vld [vmem:[%s5040_s5 + $0x98] sm:$0xff] }
  0x3f   : > { %2698 = vmatmul.mubr.msk.f32.gmra.mrb[4].mxu0 %vm104_vm1, %v315_v13  ;;  %v3253_v13 = vpack.c.bf16 %v865_v12, %v864_v11  ;;  %v2745_v11 = vld [vmem:[%s5042_s7 + $0xf0] sm:$0xff]  ;;  %v2747_v12 = vld [vmem:[%s5042_s7 + $0x100] sm:$0xff] }
  0x40   : > { %406 = vmatprep.mubr.f32.mxu0 %v3663_v7 }
  0x43   : > { %2699 = vmatmul.mubr.msk.f32.gmra.mrb[6].mxu0 %vm104_vm1, %v314_v10  ;;  %v3250_v10 = vpack.c.bf16 %v863_v9, %v862_v8  ;;  %v2748_v8 = vld [vmem:[%s5042_s7 + $0x108] sm:$0xff]  ;;  %v3291_v9 = vpack.c.bf16 %v2743_v5, %v2741_v4 }
  0x44   : > { %510 = vmatprep.mubr.f32.mxu0 %v3663_v7 }
  0x47   : > { %2708 = vmatmul.mubr.msk.f32.vlgmr.msra.gmra.mrb[0].mxu0 %vm104_vm1, %v433_v15  ;;  %v950_v15 = vld [vmem:[%s5041_s6 + $0x8] sm:$0xff] }
  0x48   : > { %516 = vmatprep.mubr.f32.mxu0 %v3663_v7  ;;  %3200 = vmatpush1.bf16.msra.mxu0 %v3199_v23  ;;  %v3256_v26 = vpack.c.bf16 %v950_v15, %v949_v22  ;;  %v2754_v15 = vld [vmem:[%s5042_s7 + $0x138] sm:$0xff] }
  0x49   : > { %3202 = vmatprep.subr.bf16.mxu0 %v3201_v24 }
  0x4b   : > { %2709 = vmatmul.mubr.msk.f32.gmra.mrb[2].mxu0 %vm104_vm1, %v435_v27  ;;  %v951_v27 = vld [vmem:[%s5041_s6 + $0x10] sm:$0xff] }
  0x4c   : > { %522 = vmatprep.mubr.f32.mxu0 %v3663_v7  ;;  %3204 = vmatpush1.bf16.msra.mxu0 %v3203_v19 }
  0x4d   : > { %3286 = vmatprep.subr.bf16.mxu0 %v3285_v62  ;;  %v1064_v62 = vld [vmem:[%s5042_s7 + $0x30] sm:$0xff] }
  0x4f   : > { %2710 = vmatmul.mubr.msk.f32.gmra.mrb[4].mxu0 %vm104_vm1, %v437_v30 }
  0x50   : > { %528 = vmatprep.mubr.f32.mxu0 %v3663_v7 }
  0x53   : > { %2711 = vmatmul.mubr.msk.f32.gmra.mrb[6].mxu0 %vm104_vm1, %v436_v29  ;;  %v952_v29 = vld [vmem:[%s5041_s6 + $0x18] sm:$0xff] }
  0x54   : > { %632 = vmatprep.mubr.f32.mxu0 %v3663_v7 }
  0x57   : > { %2720 = vmatmul.mubr.msk.f32.vlgmr.msra.gmra.mrb[0].mxu0 %vm104_vm1, %v3855_v41 }
  0x58   : > { %638 = vmatprep.mubr.f32.mxu0 %v3663_v7 }
  0x5b   : > { %2721 = vmatmul.mubr.msk.f32.gmra.mrb[2].mxu0 %vm104_vm1, %v3860_v43  ;;  %v666_v43 = vld [vmem:[%s5063_s27 + $0x8] sm:$0x3f] }
  0x5c   : > { %644 = vmatprep.mubr.f32.mxu0 %v3663_v7 }
  0x5f   : > { %2722 = vmatmul.mubr.msk.f32.gmra.mrb[4].mxu0 %vm104_vm1, %v3867_v45  ;;  %v847_v45 = vld [vmem:[%s5040_s5 + $0x8] sm:$0xff]  ;;  %s3669_s5 = smov (%p65_p0), [#allocation3]  }
  0x60   : > { %650 = vmatprep.mubr.f32.mxu0 %v3663_v7  ;;  %v3226_v47 = vpack.c.bf16 %v847_v45, %v846_v44  ;;  %v961_v45 = vld [vmem:[%s5041_s6 + $0x60] sm:$0xff] }
  0x63   : > { %2723 = vmatmul.mubr.msk.f32.gmra.mrb[6].mxu0 %vm104_vm1, %v558_v42  ;;  %v665_v42 = vld [vmem:[%s5063_s27] sm:$0xff] }
  0x64   : > { %1183 = vmatprep.mubr.f32.mxu0 %v3663_v7 }
 0x12a   : > { %v634_v31 = vpop.f32.mrb[0].mxu0 }
 0x12b   : > { %v636_v32 = vpop.f32.mrb[1].mxu0 }
 0x12e   : > { %v640_v33 = vpop.f32.mrb[2].mxu0 }
 0x12f   : > { %v3207_v34 = vpack.c.bf16 %v640_v33, %v634_v31  ;;  %v642_v35 = vpop.f32.mrb[3].mxu0  ;;  %v3259_v33 = vpack.c.bf16 %v952_v29, %v951_v27  ;;  %v2758_v27 = vld [vmem:[%s5042_s7 + $0x158] sm:$0xf]  ;;  %v2757_v29 = vld [vmem:[%s5042_s7 + $0x150] sm:$0xf] }
 0x130   : > { %v3205_v36 = vpack.c.bf16 %v642_v35, %v636_v32  ;;  %v954_v35 = vld [vmem:[%s5041_s6 + $0x28] sm:$0xff] }
 0x132   : > { %v646_v37 = vpop.f32.mrb[4].mxu0  ;;  %3206 = vmatprep.subr.bf16.mxu1 %v3205_v36 }
 0x133   : > { %v648_v38 = vpop.f32.mrb[5].mxu0  ;;  %3208 = vmatpush1.bf16.msra.mxu1 %v3207_v34 }
 0x136   : > { %v652_v39 = vpop.f32.mrb[6].mxu0 }
 0x137   : > { %v3212_v40 = vpack.c.bf16 %v652_v39, %v646_v37  ;;  %v654_v41 = vpop.f32.mrb[7].mxu0  ;;  %v955_v37 = vld [vmem:[%s5041_s6 + $0x30] sm:$0xff] }
 0x138   : > { %v3209_v28 = vpack.c.bf16 %v654_v41, %v648_v38  ;;  %v956_v38 = vld [vmem:[%s5041_s6 + $0x38] sm:$0xff]  ;;  %v958_v41 = vld [vmem:[%s5041_s6 + $0x48] sm:$0xff] }
 0x139   : > { %v3265_v39 = vpack.c.bf16 %v956_v38, %v955_v37  ;;  %v2736_v37 = vld [vmem:[%s5064_s23] ss:$0 sm:$0xff] }
 0x13a   : > { %3211 = vmatprep.subr.msk.bf16.mxu1 %vm3210_vm6, %v3209_v28 }
 0x13b   : > { %3214 = vmatpush1.bf16.msk.msra.mxu1 %vm3210_vm6, %v3212_v40 }
 0x13c   : > { %3216 = vmatprep.subr.bf16.mxu1 %v3205_v36 }
 0x13e   : > { %2726 = vmatmul.mubr.msk.f32.vlgmr.msra.gmra.mrb[0].mxu1 %vm667_vm7, %v665_v42  ;;  %v959_v42 = vld [vmem:[%s5041_s6 + $0x50] sm:$0xff] }
 0x13f   : > { %3218 = vmatpush1.bf16.msra.mxu1 %v3207_v34  ;;  %750 = vmatprep.mubr.f32.mxu1 %v3663_v7  ;;  %v953_v34 = vld [vmem:[%s5041_s6 + $0x20] sm:$0xff] }
 0x140   : > { %3221 = vmatprep.subr.msk.bf16.mxu1 %vm3210_vm6, %v3209_v28  ;;  %v3262_v36 = vpack.c.bf16 %v954_v35, %v953_v34 }
 0x142   : > { %2727 = vmatmul.mubr.msk.f32.gmra.mrb[2].mxu1 %vm667_vm7, %v666_v43  ;;  %v960_v43 = vld [vmem:[%s5041_s6 + $0x58] sm:$0xff] }
 0x143   : > { %3224 = vmatpush1.bf16.msk.msra.mxu1 %vm3210_vm6, %v3212_v40  ;;  %829 = vmatprep.mubr.f32.mxu1 %v3663_v7  ;;  %v957_v40 = vld [vmem:[%s5041_s6 + $0x40] sm:$0xff]  ;;  %v3271_v44 = vpack.c.bf16 %v960_v43, %v959_v42 }
 0x144   : > { %3225 = vmatprep.subr.bf16.mxu1 %v3665_v48  ;;  %v3268_v28 = vpack.c.bf16 %v958_v41, %v957_v40 }
 0x146   : > { %2730 = vmatmul.mubr.msk.f32.vlgmr.msra.gmra.mrb[4].mxu1 %vm667_vm7, %v757_v46  ;;  %v962_v46 = vld [vmem:[%s5041_s6 + $0x68] sm:$0xff] }
 0x147   : > { %835 = vmatprep.mubr.f32.mxu1 %v3663_v7  ;;  %3227 = vmatpush1.bf16.msra.mxu1 %v3226_v47  ;;  %v3274_v47 = vpack.c.bf16 %v962_v46, %v961_v45  ;;  %v1060_v45 = vld [vmem:[%s5042_s7 + $0x10] sm:$0xff] }
 0x148   : > { %3228 = vmatprep.subr.bf16.mxu1 %v3665_v48 }
 0x14a   : > { %2731 = vmatmul.mubr.msk.f32.gmra.mrb[6].mxu1 %vm667_vm7, %v758_v51  ;;  %v3277_v51 = vpack.c.bf16 %v964_v50, %v963_v49  ;;  %v1063_v50 = vld [vmem:[%s5042_s7 + $0x28] sm:$0xff] }
 0x14b   : > { %3230 = vmatpush1.bf16.msra.mxu1 %v3229_v52  ;;  %v965_v52 = vld [vmem:[%s5041_s6 + $0x80] sm:$0xff] }
 0x14c   : > { %3231 = vmatprep.subr.bf16.mxu1 %v3665_v48  ;;  %v3280_v54 = vpack.c.bf16 %v966_v53, %v965_v52 }
 0x14f   : > { %3233 = vmatpush1.bf16.msra.mxu1 %v3232_v55  ;;  %v967_v55 = vld [vmem:[%s5041_s6 + $0x90] sm:$0xff] }
 0x150   : > { %3234 = vmatprep.subr.bf16.mxu1 %v3665_v48  ;;  %v3283_v57 = vpack.c.bf16 %v968_v56, %v967_v55 }
 0x153   : > { %3236 = vmatpush1.bf16.msra.mxu1 %v3235_v58  ;;  %v969_v58 = vld [vmem:[%s5041_s6 + $0xa0] sm:$0xff]  ;;  %s2647_s6 = sshll.u32 (%p65_p0), %s3669_s5, 4  ;;  %s2648_s6 = int_to_ptr.vmem [resolvable:$true] %s2647_s6 }
 0x154   : > { %3237 = vmatprep.subr.bf16.mxu1 %v3665_v48  ;;  %p3636_p2 = scmp.lt.s32.totalorder (%p65_p0), %s2648_s6, %s2648_s6 }
 0x157   : > { %3239 = vmatpush1.bf16.msra.mxu1 %v3238_v61  ;;  %v2737_v61 = vld [vmem:[%s5042_s7 + $0xb0] sm:$0xff] }
 0x158   : > { %3240 = vmatprep.subr.bf16.mxu1 %v3665_v48  ;;  %v3287_v2 = vpack.c.bf16 %v2739_v63, %v2737_v61  ;;  %v1062_v61 = vld [vmem:[%s5042_s7 + $0x20] sm:$0xff] }
 0x159   : > { %v3311_v5 = vpack.c.bf16 %v1064_v62, %v1062_v61  ;;  %v2794_v61 = vld [vmem:[%s5042_s7 + $0x218] sm:$0xff]  ;;  %v2796_v62 = vld [vmem:[%s5042_s7 + $0x228] sm:$0xff] }
 0x15a   : > { %3288 = vmatpush1.bf16.msra.mxu0 %v3287_v2 }
 0x15b   : > { %3242 = vmatpush1.bf16.msra.mxu1 %v3241_v0  ;;  %v2742_v0 = vld [vmem:[%s5042_s7 + $0xd8] sm:$0xff] }
 0x15c   : > { %3243 = vmatprep.subr.bf16.mxu1 %v3665_v48 }
 0x15f   : > { %3245 = vmatpush1.bf16.msra.mxu1 %v3244_v3  ;;  %v3289_v3 = vpack.c.bf16 %v2744_v1, %v2742_v0  ;;  %v1067_v0 = vld [vmem:[%s5042_s7 + $0x48] sm:$0xff]  ;;  %v1069_v1 = vld [vmem:[%s5042_s7 + $0x58] sm:$0xff] }
 0x160   : > { %3246 = vmatprep.subr.bf16.mxu1 %v3665_v48 }
 0x161   : > { %3290 = vmatprep.subr.bf16.mxu0 %v3289_v3 }
 0x162   : > { %3292 = vmatpush1.bf16.msra.mxu0 %v3291_v9  ;;  %v1068_v9 = vld [vmem:[%s5042_s7 + $0x50] sm:$0xff] }
 0x163   : > { %3248 = vmatpush1.bf16.msra.mxu1 %v3247_v6  ;;  %v2746_v6 = vld [vmem:[%s5042_s7 + $0xf8] sm:$0xff] }
 0x164   : > { %3249 = vmatprep.subr.bf16.mxu1 %v3665_v48 }
 0x167   : > { %3251 = vmatpush1.bf16.msra.mxu1 %v3250_v10  ;;  %v3293_v10 = vpack.c.bf16 %v2748_v8, %v2746_v6  ;;  %v3313_v6 = vpack.c.bf16 %v1069_v1, %v1067_v0  ;;  %v1066_v8 = vld [vmem:[%s5042_s7 + $0x40] sm:$0xff]  ;;  %v2798_v1 = vld [vmem:[%s5042_s7 + $0x238] sm:$0xff] }
 0x168   : > { %3252 = vmatprep.subr.bf16.mxu1 %v3665_v48  ;;  %v2795_v0 = vld [vmem:[%s5042_s7 + $0x220] sm:$0xff] }
 0x169   : > { %3294 = vmatprep.subr.bf16.mxu0 %v3293_v10  ;;  %v1071_v10 = vld [vmem:[%s5042_s7 + $0x68] sm:$0xff] }
 0x16b   : > { %3254 = vmatpush1.bf16.msra.mxu1 %v3253_v13  ;;  %v3295_v13 = vpack.c.bf16 %v2747_v12, %v2745_v11  ;;  %v1073_v11 = vld [vmem:[%s5042_s7 + $0x78] sm:$0xff]  ;;  %v3315_v12 = vpack.c.bf16 %v1068_v9, %v1066_v8  ;;  %v3345_v8 = vpack.c.bf16 %v2796_v62, %v2794_v61  ;;  %v2835_v62 = vld [vmem:[%s5042_s7 + $0x340] sm:$0xff] }
 0x16c   : > { %914 = vmatprep.subr.mxu1 %v3663_v7 }
 0x16d   : > { %3296 = vmatpush1.bf16.msra.mxu0 %v3295_v13  ;;  %v3317_v13 = vpack.c.bf16 %v1073_v11, %v1071_v10  ;;  %v2797_v11 = vld [vmem:[%s5042_s7 + $0x230] sm:$0xff] }
 0x16f   : > { %915 = vmatpush1.msra.mxu1 %v866_v14  ;;  %v2750_v14 = vld [vmem:[%s5042_s7 + $0x118] sm:$0xff] }
 0x170   : > { %3255 = vmatprep.subr.bf16.mxu1 %v3665_v48 }
 0x211   : > { %v746_v17 = vpop.f32.mrb[0].mxu1 }
 0x212   : > { %v748_v18 = vpop.f32.mrb[1].mxu1 }
 0x215   : > { %v752_v20 = vpop.f32.mrb[2].mxu1 }
 0x216   : > { %v754_v21 = vpop.f32.mrb[3].mxu1 }
 0x219   : > { %v831_v16 = vpop.f32.mrb[4].mxu1 }
 0x21a   : > { %v842_v23 = vmax.f32 %v746_v17, %v831_v16  ;;  %v833_v24 = vpop.f32.mrb[5].mxu1  ;;  %v2752_v17 = vld [vmem:[%s5042_s7 + $0x128] sm:$0xff] }
 0x21b   : > { %v843_v25 = vmax.f32 %v748_v18, %v833_v24  ;;  %v3297_v18 = vpack.c.bf16 %v2752_v17, %v2750_v14  ;;  %v2756_v16 = vld [vmem:[%s5042_s7 + $0x148] sm:$0xff]  ;;  %v2753_v24 = vld [vmem:[%s5042_s7 + $0x130] sm:$0xff]  ;;  %v1070_v14 = vld [vmem:[%s5042_s7 + $0x60] sm:$0xff] }
 0x21c   : > { %v1072_v17 = vld [vmem:[%s5042_s7 + $0x70] sm:$0xff] }
 0x21d   : > { %v837_v19 = vpop.f32.mrb[6].mxu1  ;;  %2732 = vmatprep.mubr.msk.f32.mxu1 %vm867_vm8, %v843_v25  ;;  %3298 = vmatprep.subr.bf16.mxu0 %v3297_v18  ;;  %v1075_v18 = vld [vmem:[%s5042_s7 + $0x88] sm:$0xff] }
 0x21e   : > { %v844_v30 = vmax.f32 %v752_v20, %v837_v19  ;;  %v839_v31 = vpop.f32.mrb[7].mxu1  ;;  %939 = vmatmul.mubr.f32.vlgmr.msra.gmra.mrb[8].mxu1 %v842_v23  ;;  %v2749_v20 = vld [vmem:[%s5042_s7 + $0x110] sm:$0xff]  ;;  %v1059_v19 = vld [vmem:[%s5042_s7 + $0x8] sm:$0xff] }
 0x21f   : > { %v845_v32 = vmax.f32 %v754_v21, %v839_v31  ;;  %3257 = vmatpush1.bf16.msra.mxu1 %v3256_v26  ;;  %v2751_v21 = vld [vmem:[%s5042_s7 + $0x120] sm:$0xff] }
 0x220   : > { %3258 = vmatprep.subr.bf16.mxu1 %v3665_v48  ;;  %v3299_v22 = vpack.c.bf16 %v2751_v21, %v2749_v20  ;;  %v1077_v20 = vld [vmem:[%s5042_s7 + $0x98] sm:$0xff]  ;;  %v3319_v21 = vpack.c.bf16 %v1072_v17, %v1070_v14  ;;  %v2804_v14 = vld [vmem:[%s5042_s7 + $0x268] sm:$0xff] }
 0x221   : > { %2733 = vmatprep.mubr.msk.f32.mxu1 %vm867_vm8, %v845_v32 }
 0x222   : > { %944 = vmatmul.mubr.f32.gmra.mrb[10].mxu1 %v844_v30  ;;  %3300 = vmatpush1.bf16.msra.mxu0 %v3299_v22  ;;  %v3321_v22 = vpack.c.bf16 %v1077_v20, %v1075_v18  ;;  %v2801_v20 = vld [vmem:[%s5042_s7 + $0x250] sm:$0xff] }
 0x223   : > { %3260 = vmatpush1.bf16.msra.mxu1 %v3259_v33  ;;  %2734 = vmatprep.mubr.msk.f32.mxu1 %vm867_vm8, %v843_v25  ;;  %v2755_v25 = vld [vmem:[%s5042_s7 + $0x140] sm:$0xff] }
 0x224   : > { %3261 = vmatprep.subr.bf16.mxu1 %v3665_v48  ;;  %v3303_v26 = vpack.c.bf16 %v2755_v25, %v2753_v24  ;;  %v1079_v24 = vld [vmem:[%s5042_s7 + $0xa8] sm:$0xf] }
 0x225   : > { %v2768_v25 = vld [vmem:[%s5042_s7 + $0x168] sm:$0xff] }
 0x227   : > { %3263 = vmatpush1.bf16.msra.mxu1 %v3262_v36 }
 0x228   : > { %3264 = vmatprep.subr.bf16.mxu1 %v3665_v48 }
 0x22b   : > { %3266 = vmatpush1.bf16.msra.mxu1 %v3265_v39 }
 0x22c   : > { %3267 = vmatprep.subr.bf16.mxu1 %v3665_v48 }
 0x22f   : > { %3269 = vmatpush1.bf16.msra.mxu1 %v3268_v28 }
 0x230   : > { %3270 = vmatprep.subr.bf16.mxu1 %v3665_v48 }
 0x233   : > { %3272 = vmatpush1.bf16.msra.mxu1 %v3271_v44  ;;  %v1058_v44 = vld [vmem:[%s5042_s7] sm:$0xff] }
 0x234   : > { %3273 = vmatprep.subr.bf16.mxu1 %v3665_v48  ;;  %v3307_v49 = vpack.c.bf16 %v1060_v45, %v1058_v44 }
 0x237   : > { %3275 = vmatpush1.bf16.msra.mxu1 %v3274_v47 }
 0x238   : > { %3276 = vmatprep.subr.bf16.mxu1 %v3665_v48 }
 0x23b   : > { %3278 = vmatpush1.bf16.msra.mxu1 %v3277_v51  ;;  %v1065_v51 = vld [vmem:[%s5042_s7 + $0x38] sm:$0xff] }
 0x23c   : > { %3279 = vmatprep.subr.bf16.mxu1 %v3665_v48  ;;  %v3309_v60 = vpack.c.bf16 %v1065_v51, %v1063_v50  ;;  %v2784_v50 = vld [vmem:[%s5042_s7 + $0x1e8] sm:$0xff]  ;;  %v2786_v51 = vld [vmem:[%s5042_s7 + $0x1f8] sm:$0xff] }
 0x23f   : > { %3281 = vmatpush1.bf16.msra.mxu1 %v3280_v54 }
 0x240   : > { %3282 = vmatprep.subr.bf16.mxu1 %v3665_v48 }
 0x243   : > { %3284 = vmatpush1.bf16.msra.mxu1 %v3283_v57 }
 0x244   : > { %1010 = vmatprep.subr.mxu1 %v3663_v7 }
 0x247   : > { %1011 = vmatpush1.msra.mxu1 %v969_v58 }
 0x248   : > { %1035 = vmatmul.mubr.f32.vlgmr.msra.gmra.mrb[12].mxu1 %v842_v23  ;;  %v3301_v23 = vpack.c.bf16 %v2756_v16, %v2754_v15  ;;  %v1074_v15 = vld [vmem:[%s5042_s7 + $0x80] sm:$0xff]  ;;  %v1076_v16 = vld [vmem:[%s5042_s7 + $0x90] sm:$0xff] }
 0x249   : > { %2735 = vmatprep.mubr.msk.f32.mxu1 %vm867_vm8, %v845_v32 }
 0x24a   : > { %3302 = vmatprep.subr.bf16.mxu0 %v3301_v23  ;;  %v3323_v23 = vpack.c.bf16 %v1076_v16, %v1074_v15 }
 0x24b   : > { %3304 = vmatpush1.bf16.msra.mxu0 %v3303_v26  ;;  %v2770_v26 = vld [vmem:[%s5042_s7 + $0x178] sm:$0xff] }
 0x24c   : > { %1040 = vmatmul.mubr.f32.gmra.mrb[14].mxu1 %v844_v30  ;;  %2759 = vmatprep.subr.msk.mxu0 %vm552_vm2, %v2758_v27  ;;  %v1061_v30 = vld [vmem:[%s5042_s7 + $0x18] sm:$0xff]  ;;  %v2767_v27 = vld [vmem:[%s5042_s7 + $0x160] sm:$0xff] }
 0x24d   : > { %1785 = vmatprep.mubr.f32.mxu1 %v3663_v7  ;;  %v3305_v31 = vpack.c.bf16 %v1061_v30, %v1059_v19  ;;  %v2772_v19 = vld [vmem:[%s5042_s7 + $0x188] sm:$0xff]  ;;  %v2774_v30 = vld [vmem:[%s5042_s7 + $0x198] sm:$0xff] }
 0x24f   : > { %2760 = vmatpush1.msk.msra.mxu0 %vm552_vm2, %v2757_v29  ;;  %v2769_v29 = vld [vmem:[%s5042_s7 + $0x170] sm:$0xff] }
 0x250   : > { %3306 = vmatprep.subr.bf16.mxu0 %v3305_v31  ;;  %v1078_v31 = vld [vmem:[%s5042_s7 + $0xa0] sm:$0xf] }
 0x2f1   : > { %v940_v32 = vpop.f32.mrb[8].mxu1 }
 0x2f2   : > { %v942_v33 = vpop.f32.mrb[9].mxu1 }
 0x2f3   : > { %v3327_v33 = vpack.c.bf16 %v2769_v29, %v2767_v27  ;;  %v2809_v29 = vld [vmem:[%s5042_s7 + $0x290] sm:$0xff] }
 0x2f5   : > { %v945_v34 = vpop.f32.mrb[10].mxu1 }
 0x2f6   : > { %v947_v35 = vpop.f32.mrb[11].mxu1 }
 0x2f7   : > { %v2771_v35 = vld [vmem:[%s5042_s7 + $0x180] sm:$0xff] }
 0x31b   : > { %v1036_v36 = vpop.f32.mrb[12].mxu1 }
 0x31c   : > { %v1045_v38 = vmax.f32 %v940_v32, %v1036_v36  ;;  %v1038_v39 = vpop.f32.mrb[13].mxu1  ;;  %v3325_v32 = vpack.c.bf16 %v2770_v26, %v2768_v25  ;;  %v2773_v36 = vld [vmem:[%s5042_s7 + $0x190] sm:$0xff]  ;;  %v2810_v25 = vld [vmem:[%s5042_s7 + $0x298] sm:$0xff] }
 0x31d   : > { %v3331_v39 = vpack.c.bf16 %v2773_v36, %v2771_v35  ;;  %v2821_v35 = vld [vmem:[%s5042_s7 + $0x2d0] sm:$0xff]  ;;  %v2824_v36 = vld [vmem:[%s5042_s7 + $0x2e8] sm:$0xff] }
 0x31e   : > { %v1054_v40 = vadd.f32 %v2736_v37, %v1045_v38  ;;  %v2778_v38 = vld [vmem:[%s5042_s7 + $0x1b8] sm:$0xff] }
 0x31f   : > { %v1041_v41 = vpop.f32.mrb[14].mxu1 }
 0x320   : > { %v1046_v28 = vmax.f32 %v945_v34, %v1041_v41  ;;  %v1043_v42 = vpop.f32.mrb[15].mxu1  ;;  %v4245_v43 = vmax.f32 %v1054_v40, 0.0  ;;  %v3329_v34 = vpack.c.bf16 %v2774_v30, %v2772_v19  ;;  %v2775_v41 = vld [vmem:[%s5042_s7 + $0x1a0] sm:$0xff] }
 0x321   : > { %v2780_v42 = vld [vmem:[%s5042_s7 + $0x1c8] sm:$0xff]  ;;  %v2811_v19 = vld [vmem:[%s5042_s7 + $0x2a0] sm:$0xff] }
 0x322   : > { %v1055_v46 = vadd.f32 %v2736_v37, %v1046_v28  ;;  %v1105_v52 = vrot.slane %v4245_v43, 1  ;;  %v1306_v53 = vrot.slane %v4245_v43, 2  ;;  %v1423_v54 = vrot.slane %v4245_v43, 3  ;;  %v2776_v37 = vld [vmem:[%s5042_s7 + $0x1a8] sm:$0xff]  ;;  %v2777_v28 = vld [vmem:[%s5042_s7 + $0x1b0] sm:$0xff] }
 0x323   : > { %v1540_v55 = vrot.slane %v4245_v43, 4  ;;  %v3333_v40 = vpack.c.bf16 %v2778_v38, %v2776_v37  ;;  %v3335_v44 = vpack.c.bf16 %v2777_v28, %v2775_v41  ;;  %v3363_v30 = vpack.c.bf16 %v2811_v19, %v2809_v29  ;;  %v2826_v37 = vld [vmem:[%s5042_s7 + $0x2f8] sm:$0xff]  ;;  %v2813_v38 = vld [vmem:[%s5042_s7 + $0x2b0] sm:$0xf]  ;;  %v2823_v28 = vld [vmem:[%s5042_s7 + $0x2e0] sm:$0xff] }
 0x324   : > { %v4253_v47 = vmax.f32 %v1055_v46, 0.0  ;;  %v2779_v46 = vld [vmem:[%s5042_s7 + $0x1c0] sm:$0xff]  ;;  %v3369_v41 = vpack.c.bf16 %v2826_v37, %v2824_v36  ;;  %v1807_v19 = vld [vmem:[%s5046_s11 + $0x68] sm:$0xff]  ;;  %v1812_v37 = vld [vmem:[%s5046_s11 + $0x90] sm:$0xff] }
 0x325   : > { %v1806_v29 = vld [vmem:[%s5046_s11 + $0x60] sm:$0xff] }
 0x326   : > { %v1106_v56 = vrot.slane %v4253_v47, 1  ;;  %v1307_v57 = vrot.slane %v4253_v47, 2  ;;  %v1424_v58 = vrot.slane %v4253_v47, 3  ;;  %v1541_v59 = vrot.slane %v4253_v47, 4 }
 0x328   : > { %v1107_v63 = vsel %vm96_vm0, %v1105_v52, %v1106_v56  ;;  %v4285_v2 = vsel %vm308_vm3, %v1306_v53, %v1307_v57  ;;  %v4290_v3 = vsel %vm430_vm4, %v1423_v54, %v1424_v58  ;;  %v4295_v4 = vsel %vm552_vm2, %v1540_v55, %v1541_v59  ;;  %v2783_v54 = vld [vmem:[%s5042_s7 + $0x1e0] sm:$0xff]  ;;  %v2785_v55 = vld [vmem:[%s5042_s7 + $0x1f0] sm:$0xff] }
 0x329   : > { %2761 = vmatmul.mubr.msk.f32.vlgmr.msra.gmra.mrb[8].mxu0 %vm1108_vm9, %v1107_v63  ;;  %v3341_v53 = vpack.c.bf16 %v2786_v51, %v2784_v50  ;;  %v2793_v63 = vld [vmem:[%s5042_s7 + $0x210] sm:$0xff]  ;;  %v2832_v51 = vld [vmem:[%s5042_s7 + $0x328] sm:$0xff]  ;;  %vm2000_vm0 = vcmask 650243   ;;  %vm3667_vm3 = vmmov (%p65_p0), 0   ;;  %vm2030_vm4 = vcmask (%p65_p0), 654336  }
 0x32a   : > { %3308 = vmatpush1.bf16.msra.mxu0 %v3307_v49  ;;  %1189 = vmatprep.mubr.f32.mxu0 %v3663_v7  ;;  %v2781_v49 = vld [vmem:[%s5042_s7 + $0x1d0] sm:$0xff]  ;;  %v3347_v9 = vpack.c.bf16 %v2795_v0, %v2793_v63 }
 0x32b   : > { %3310 = vmatprep.subr.bf16.mxu0 %v3309_v60  ;;  %v3339_v52 = vpack.c.bf16 %v2781_v49, %v2779_v46  ;;  %v2788_v60 = vld [vmem:[%s5042_s7 + $0x208] sm:$0xf]  ;;  %v2827_v49 = vld [vmem:[%s5042_s7 + $0x300] sm:$0xff]  ;;  %v2829_v50 = vld [vmem:[%s5042_s7 + $0x310] sm:$0xff] }
 0x32c   : > { %v2837_v63 = vld [vmem:[%s5042_s7 + $0x350] sm:$0xff] }
 0x32d   : > { %2762 = vmatmul.mubr.msk.f32.gmra.mrb[10].mxu0 %vm1108_vm9, %v1106_v56  ;;  %v3343_v56 = vpack.c.bf16 %v2785_v55, %v2783_v54  ;;  %v2831_v54 = vld [vmem:[%s5042_s7 + $0x320] sm:$0xff]  ;;  %v2833_v55 = vld [vmem:[%s5042_s7 + $0x330] sm:$0xff]  ;;  %v3383_v0 = vpack.c.bf16 %v2837_v63, %v2835_v62 }
 0x32e   : > { %3312 = vmatpush1.bf16.msra.mxu0 %v3311_v5  ;;  %1270 = vmatprep.mubr.f32.mxu0 %v3663_v7  ;;  %v2800_v5 = vld [vmem:[%s5042_s7 + $0x248] sm:$0xff]  ;;  %v1897_v63 = vld [vmem:[%s5047_s12 + $0x50] sm:$0xff] }
 0x32f   : > { %3314 = vmatprep.subr.bf16.mxu0 %v3313_v6  ;;  %v2787_v6 = vld [vmem:[%s5042_s7 + $0x200] sm:$0xf]  ;;  %v3349_v10 = vpack.c.bf16 %v2800_v5, %v2798_v1  ;;  %v2840_v1 = vld [vmem:[%s5042_s7 + $0x368] sm:$0xf] }
 0x330   : > { %v2839_v5 = vld [vmem:[%s5042_s7 + $0x360] sm:$0xf] }
 0x332   : > { %3316 = vmatpush1.bf16.msra.mxu0 %v3315_v12  ;;  %v2799_v12 = vld [vmem:[%s5042_s7 + $0x240] sm:$0xff] }
 0x333   : > { %3318 = vmatprep.subr.bf16.mxu0 %v3317_v13  ;;  %v2802_v13 = vld [vmem:[%s5042_s7 + $0x258] sm:$0xff]  ;;  %v3351_v17 = vpack.c.bf16 %v2799_v12, %v2797_v11 }
 0x334   : > { %v3353_v18 = vpack.c.bf16 %v2804_v14, %v2802_v13  ;;  %v1796_v14 = vld [vmem:[%s5046_s11 + $0x10] sm:$0xff] }
 0x336   : > { %3320 = vmatpush1.bf16.msra.mxu0 %v3319_v21  ;;  %v2803_v21 = vld [vmem:[%s5042_s7 + $0x260] sm:$0xff] }
 0x337   : > { %3322 = vmatprep.subr.bf16.mxu0 %v3321_v22  ;;  %v2806_v22 = vld [vmem:[%s5042_s7 + $0x278] sm:$0xff]  ;;  %v3355_v15 = vpack.c.bf16 %v2803_v21, %v2801_v20  ;;  %v1798_v20 = vld [vmem:[%s5046_s11 + $0x20] sm:$0xff]  ;;  %v1799_v21 = vld [vmem:[%s5046_s11 + $0x28] sm:$0xff] }
 0x33a   : > { %3324 = vmatpush1.bf16.msra.mxu0 %v3323_v23  ;;  %v2805_v23 = vld [vmem:[%s5042_s7 + $0x270] sm:$0xff] }
 0x33b   : > { %2763 = vmatprep.subr.msk.mxu0 %vm552_vm2, %v1079_v24  ;;  %v2807_v24 = vld [vmem:[%s5042_s7 + $0x280] sm:$0xff] }
 0x33c   : > { %v3359_v26 = vpack.c.bf16 %v2807_v24, %v2805_v23  ;;  %v1802_v23 = vld [vmem:[%s5046_s11 + $0x40] sm:$0xff]  ;;  %v1803_v24 = vld [vmem:[%s5046_s11 + $0x48] sm:$0xff] }
 0x33e   : > { %2764 = vmatpush1.msk.msra.mxu0 %vm552_vm2, %v1078_v31  ;;  %v2814_v31 = vld [vmem:[%s5042_s7 + $0x2b8] sm:$0xf] }
 0x33f   : > { %2765 = vmatmul.mubr.msk.f32.vlgmr.msra.gmra.mrb[8].mxu0 %vm1108_vm9, %v4245_v43  ;;  %3326 = vmatprep.subr.bf16.mxu0 %v3325_v32  ;;  %v2782_v43 = vld [vmem:[%s5042_s7 + $0x1d8] sm:$0xff]  ;;  %v2820_v32 = vld [vmem:[%s5042_s7 + $0x2c8] sm:$0xff] }
 0x340   : > { %3328 = vmatpush1.bf16.msra.mxu0 %v3327_v33  ;;  %1276 = vmatprep.mubr.f32.mxu0 %v3663_v7  ;;  %v3337_v45 = vpack.c.bf16 %v2782_v43, %v2780_v42  ;;  %v2822_v33 = vld [vmem:[%s5042_s7 + $0x2d8] sm:$0xff]  ;;  %v2825_v42 = vld [vmem:[%s5042_s7 + $0x2f0] sm:$0xff]  ;;  %v2828_v43 = vld [vmem:[%s5042_s7 + $0x308] sm:$0xff] }
 0x341   : > { %3330 = vmatprep.subr.bf16.mxu0 %v3329_v34  ;;  %v2819_v34 = vld [vmem:[%s5042_s7 + $0x2c0] sm:$0xff] }
 0x343   : > { %2766 = vmatmul.mubr.msk.f32.gmra.mrb[10].mxu0 %vm1108_vm9, %v4253_v47  ;;  %v1795_v47 = vld [vmem:[%s5046_s11 + $0x8] sm:$0xff] }
 0x344   : > { %3332 = vmatpush1.bf16.msra.mxu0 %v3331_v39  ;;  %1383 = vmatprep.mubr.f32.mxu0 %v3663_v7  ;;  %v3365_v39 = vpack.c.bf16 %v2822_v33, %v2820_v32  ;;  %v1809_v32 = vld [vmem:[%s5046_s11 + $0x78] sm:$0xff] }
 0x345   : > { %3334 = vmatprep.subr.bf16.mxu0 %v3333_v40  ;;  %v3367_v40 = vpack.c.bf16 %v2821_v35, %v2819_v34  ;;  %v1810_v34 = vld [vmem:[%s5046_s11 + $0x80] sm:$0xff]  ;;  %v1811_v35 = vld [vmem:[%s5046_s11 + $0x88] sm:$0xff] }
 0x346   : > { %v3422_v36 = vpack.c.bf16 %v1811_v35, %v1810_v34  ;;  %v2862_v34 = vld [vmem:[%s5048_s13 + $0x70] sm:$0xff] (%p65_p0)  ;;  %v2863_v35 = vld [vmem:[%s5048_s13 + $0x78] sm:$0xff] (%p65_p0) }
 0x348   : > { %3336 = vmatpush1.bf16.msra.mxu0 %v3335_v44  ;;  %v2830_v44 = vld [vmem:[%s5042_s7 + $0x318] sm:$0xff] }
 0x349   : > { %3338 = vmatprep.subr.bf16.mxu0 %v3337_v45  ;;  %v3371_v45 = vpack.c.bf16 %v2825_v42, %v2823_v28  ;;  %v3373_v46 = vpack.c.bf16 %v2830_v44, %v2828_v43 }
 0x34c   : > { %3340 = vmatpush1.bf16.msra.mxu0 %v3339_v52  ;;  %v3375_v52 = vpack.c.bf16 %v2829_v50, %v2827_v49  ;;  %v1889_v50 = vld [vmem:[%s5047_s12 + $0x10] sm:$0xff] }
 0x34d   : > { %3342 = vmatprep.subr.bf16.mxu0 %v3341_v53 }
 0x350   : > { %3344 = vmatpush1.bf16.msra.mxu0 %v3343_v56  ;;  %v2836_v56 = vld [vmem:[%s5042_s7 + $0x348] sm:$0xff] }
 0x351   : > { %2789 = vmatprep.subr.msk.mxu0 %vm552_vm2, %v2788_v60  ;;  %v3379_v60 = vpack.c.bf16 %v2833_v55, %v2831_v54  ;;  %v1893_v55 = vld [vmem:[%s5047_s12 + $0x30] sm:$0xff] }
 0x354   : > { %2790 = vmatpush1.msk.msra.mxu0 %vm552_vm2, %v2787_v6 }
 0x355   : > { %2791 = vmatmul.mubr.msk.f32.vlgmr.msra.gmra.mrb[8].mxu0 %vm1108_vm9, %v4285_v2  ;;  %3346 = vmatprep.subr.bf16.mxu0 %v3345_v8  ;;  %v2808_v2 = vld [vmem:[%s5042_s7 + $0x288] sm:$0xff] }
 0x356   : > { %3348 = vmatpush1.bf16.msra.mxu0 %v3347_v9  ;;  %1389 = vmatprep.mubr.f32.mxu0 %v3663_v7  ;;  %v3357_v16 = vpack.c.bf16 %v2808_v2, %v2806_v22  ;;  %v3404_v22 = vpack.c.bf16 %v1799_v21, %v1798_v20  ;;  %v1800_v2 = vld [vmem:[%s5046_s11 + $0x30] sm:$0xff]  ;;  %v2853_v20 = vld [vmem:[%s5043_s8] ss:$0 sm:$0xff] }
 0x357   : > { %3350 = vmatprep.subr.bf16.mxu0 %v3349_v10 }
 0x359   : > { %2792 = vmatmul.mubr.msk.f32.gmra.mrb[10].mxu0 %vm1108_vm9, %v1307_v57  ;;  %v2812_v57 = vld [vmem:[%s5042_s7 + $0x2a8] sm:$0xff] }
 0x35a   : > { %3352 = vmatpush1.bf16.msra.mxu0 %v3351_v17  ;;  %1500 = vmatprep.mubr.f32.mxu0 %v3663_v7  ;;  %v3361_v27 = vpack.c.bf16 %v2812_v57, %v2810_v25  ;;  %v1797_v17 = vld [vmem:[%s5046_s11 + $0x18] sm:$0xff]  ;;  %v3410_v25 = vpack.c.bf16 %v1803_v24, %v1802_v23  ;;  %v1804_v57 = vld [vmem:[%s5046_s11 + $0x50] sm:$0xff]  ;;  %v2007_v23 = vld [vmem:[%s5048_s13] sm:$0xff] (%p65_p0)  ;;  %v3666_v24 = vmov (%p65_p0), 0.0|0.0  }
 0x35b   : > { %3354 = vmatprep.subr.bf16.mxu0 %v3353_v18  ;;  %v3401_v18 = vpack.c.bf16 %v1797_v17, %v1796_v14 }
 0x35e   : > { %3356 = vmatpush1.bf16.msra.mxu0 %v3355_v15  ;;  %v1801_v15 = vld [vmem:[%s5046_s11 + $0x38] sm:$0xff] }
 0x35f   : > { %3358 = vmatprep.subr.bf16.mxu0 %v3357_v16  ;;  %v3407_v16 = vpack.c.bf16 %v1801_v15, %v1800_v2 }
 0x362   : > { %3360 = vmatpush1.bf16.msra.mxu0 %v3359_v26  ;;  %v1805_v26 = vld [vmem:[%s5046_s11 + $0x58] sm:$0xff] }
 0x363   : > { %3362 = vmatprep.subr.bf16.mxu0 %v3361_v27  ;;  %v3413_v27 = vpack.c.bf16 %v1805_v26, %v1804_v57  ;;  %v2008_v57 = vld [vmem:[%s5048_s13 + $0x8] sm:$0xff] (%p65_p0)  ;;  %v2860_v26 = vld [vmem:[%s5048_s13 + $0x60] sm:$0xff] (%p65_p0) }
 0x366   : > { %3364 = vmatpush1.bf16.msra.mxu0 %v3363_v30  ;;  %v3416_v30 = vpack.c.bf16 %v1807_v19, %v1806_v29  ;;  %v3473_v29 = vpack.c.bf16 (%p65_p0), %v2008_v57, %v2007_v23  ;;  %v2009_v19 = vld [vmem:[%s5048_s13 + $0x10] sm:$0xff] (%p65_p0) }
 0x367   : > { %2815 = vmatprep.subr.msk.mxu0 %vm552_vm2, %v2814_v31  ;;  %v1808_v31 = vld [vmem:[%s5046_s11 + $0x70] sm:$0xff] }
 0x368   : > { %v3419_v33 = vpack.c.bf16 %v1809_v32, %v1808_v31  ;;  %v3668_v31 = vmov (%p65_p0), 0.0  }
 0x36a   : > { %2816 = vmatpush1.msk.msra.mxu0 %vm552_vm2, %v2813_v38  ;;  %v1813_v38 = vld [vmem:[%s5046_s11 + $0x98] sm:$0xff] }
 0x36b   : > { %2817 = vmatmul.mubr.msk.f32.vlgmr.msra.gmra.mrb[8].mxu0 %vm1108_vm9, %v4290_v3  ;;  %3366 = vmatprep.subr.bf16.mxu0 %v3365_v39  ;;  %v2834_v3 = vld [vmem:[%s5042_s7 + $0x338] sm:$0xff]  ;;  %v3425_v39 = vpack.c.bf16 %v1813_v38, %v1812_v37  ;;  %v2012_v37 = vld [vmem:[%s5048_s13 + $0x28] sm:$0xff] (%p65_p0)  ;;  %v3464_v38 = vpack.c.bf16 (%p65_p0), %v2863_v35, %v2862_v34 }
 0x36c   : > { %3368 = vmatpush1.bf16.msra.mxu0 %v3367_v40  ;;  %1506 = vmatprep.mubr.f32.mxu0 %v3663_v7  ;;  %v3377_v53 = vpack.c.bf16 %v2834_v3, %v2832_v51  ;;  %v1887_v40 = vld [vmem:[%s5047_s12] sm:$0xff]  ;;  %v1890_v51 = vld [vmem:[%s5047_s12 + $0x18] sm:$0xff] }
 0x36d   : > { %3370 = vmatprep.subr.bf16.mxu0 %v3369_v41  ;;  %v1888_v41 = vld [vmem:[%s5047_s12 + $0x8] sm:$0xff]  ;;  %v3431_v3 = vpack.c.bf16 %v1890_v51, %v1889_v50  ;;  %v2899_v34 = vld [vmem:[%s5048_s13 + $0x178] sm:$0xff] (%p65_p0) }
 0x36e   : > { %v3428_v49 = vpack.c.bf16 %v1888_v41, %v1887_v40  ;;  %v2864_v40 = vld [vmem:[%s5048_s13 + $0x80] sm:$0xff] (%p65_p0)  ;;  %v2865_v41 = vld [vmem:[%s5048_s13 + $0x88] sm:$0xff] (%p65_p0) }
 0x36f   : > { %2818 = vmatmul.mubr.msk.f32.gmra.mrb[10].mxu0 %vm1108_vm9, %v1424_v58  ;;  %v2838_v58 = vld [vmem:[%s5042_s7 + $0x358] sm:$0xff]  ;;  %v2016_v50 = vld [vmem:[%s5048_s13 + $0x48] sm:$0xff] (%p65_p0) }
 0x370   : > { %3372 = vmatpush1.bf16.msra.mxu0 %v3371_v45  ;;  %1617 = vmatprep.mubr.f32.mxu0 %v3663_v7  ;;  %v3381_v61 = vpack.c.bf16 %v2838_v58, %v2836_v56  ;;  %v1894_v56 = vld [vmem:[%s5047_s12 + $0x38] sm:$0xff] }
 0x371   : > { %3374 = vmatprep.subr.bf16.mxu0 %v3373_v46  ;;  %v3437_v58 = vpack.c.bf16 %v1894_v56, %v1893_v55  ;;  %v2882_v55 = vld [vmem:[%s5048_s13 + $0xf8] sm:$0xff] (%p65_p0) }
 0x374   : > { %3376 = vmatpush1.bf16.msra.mxu0 %v3375_v52  ;;  %v1891_v52 = vld [vmem:[%s5047_s12 + $0x20] sm:$0xff] }
 0x375   : > { %3378 = vmatprep.subr.bf16.mxu0 %v3377_v53  ;;  %v1892_v53 = vld [vmem:[%s5047_s12 + $0x28] sm:$0xff] }
 0x376   : > { %v3434_v54 = vpack.c.bf16 %v1892_v53, %v1891_v52  ;;  %v2870_v52 = vld [vmem:[%s5048_s13 + $0xa0] sm:$0xff] (%p65_p0)  ;;  %v2871_v53 = vld [vmem:[%s5048_s13 + $0xa8] sm:$0xff] (%p65_p0) }
 0x378   : > { %3380 = vmatpush1.bf16.msra.mxu0 %v3379_v60  ;;  %v1895_v60 = vld [vmem:[%s5047_s12 + $0x40] sm:$0xff] }
 0x379   : > { %3382 = vmatprep.subr.bf16.mxu0 %v3381_v61  ;;  %v1896_v61 = vld [vmem:[%s5047_s12 + $0x48] sm:$0xff] }
 0x37a   : > { %v3440_v62 = vpack.c.bf16 %v1896_v61, %v1895_v60 }
 0x37c   : > { %3384 = vmatpush1.bf16.msra.mxu0 %v3383_v0  ;;  %v1898_v0 = vld [vmem:[%s5047_s12 + $0x58] sm:$0xff] }
 0x37d   : > { %2841 = vmatprep.subr.msk.mxu0 %vm552_vm2, %v2840_v1  ;;  %v3443_v1 = vpack.c.bf16 %v1898_v0, %v1897_v63  ;;  %v2873_v63 = vld [vmem:[%s5048_s13 + $0xb8] sm:$0xff] (%p65_p0)  ;;  %v2883_v0 = vld [vmem:[%s5048_s13 + $0x100] sm:$0xff] (%p65_p0) }
 0x380   : > { %2842 = vmatpush1.msk.msra.mxu0 %vm552_vm2, %v2839_v5  ;;  %v1899_v5 = vld [vmem:[%s5047_s12 + $0x60] sm:$0xff] }
 0x381   : > { %2843 = vmatmul.mubr.msk.f32.vlgmr.msra.gmra.mrb[8].mxu0 %vm1108_vm9, %v4295_v4  ;;  %v1794_v4 = vld [vmem:[%s5046_s11] sm:$0xff] }
 0x382   : > { %1623 = vmatprep.mubr.f32.mxu0 %v3663_v7  ;;  %v3398_v13 = vpack.c.bf16 %v1795_v47, %v1794_v4  ;;  %v1904_v4 = vld [vmem:[%s5047_s12 + $0x88] sm:$0xff] }
 0x385   : > { %2844 = vmatmul.mubr.msk.f32.gmra.mrb[10].mxu0 %vm1108_vm9, %v1541_v59  ;;  %v1717_v59 = vld [vmem:[%s5045_s10] sm:$0x1f] }
 0x386   : > { %1710 = vmatprep.mubr.f32.mxu0 %v3663_v7  ;;  %v1634_v7 = vld [vmem:[%s5044_s9] sm:$0x1f] }
 0x454   : > { %v1619_v6 = vpop.f32.mrb[8].mxu0 }
 0x455   : > { %v1621_v8 = vpop.f32.mrb[9].mxu0 }
 0x458   : > { %v1625_v9 = vpop.f32.mrb[10].mxu0 }
 0x459   : > { %v3388_v10 = vpack.c.bf16 %v1625_v9, %v1619_v6  ;;  %v1627_v11 = vpop.f32.mrb[11].mxu0  ;;  %v1900_v6 = vld [vmem:[%s5047_s12 + $0x68] sm:$0xff]  ;;  %v1901_v9 = vld [vmem:[%s5047_s12 + $0x70] sm:$0xff] }
 0x45a   : > { %v3385_v12 = vpack.c.bf16 %v1627_v11, %v1621_v8  ;;  %v3446_v8 = vpack.c.bf16 %v1900_v6, %v1899_v5 }
 0x45c   : > { %3387 = vmatprep.subr.msk.bf16.mxu0 %vm3386_vm11, %v3385_v12  ;;  %3393 = vmatprep.subr.msk.bf16.mxu1 %vm3386_vm11, %v3385_v12  ;;  %v1903_v12 = vld [vmem:[%s5047_s12 + $0x80] sm:$0xff] }
 0x45d   : > { %3390 = vmatpush1.bf16.msk.msra.mxu0 %vm3386_vm11, %v3388_v10  ;;  %3396 = vmatpush1.bf16.msk.msra.mxu1 %vm3386_vm11, %v3388_v10  ;;  %v1902_v10 = vld [vmem:[%s5047_s12 + $0x78] sm:$0xff]  ;;  %v3452_v47 = vpack.c.bf16 %v1904_v4, %v1903_v12 }
 0x45e   : > { %3397 = vmatprep.subr.bf16.mxu1 %v3665_v48  ;;  %v3449_v11 = vpack.c.bf16 %v1902_v10, %v1901_v9  ;;  %3457 = vmatprep.subr.bf16.mxu0 (%p65_p0), %v3666_v24  ;;  %v2875_v9 = vld [vmem:[%s5048_s13 + $0xc8] sm:$0xff] (%p65_p0)  ;;  %v2885_v10 = vld [vmem:[%s5048_s13 + $0x110] sm:$0xff] (%p65_p0) }
 0x460   : > { %2847 = vmatmul.mubr.msk.f32.vlgmr.msra.gmra.mrb[12].mxu0 %vm1635_vm12, %v1634_v7  ;;  %2850 = vmatmul.mubr.msk.f32.vlgmr.msra.gmra.mrb[16].mxu1 %vm1635_vm12, %v1717_v59  ;;  %v1905_v7 = vld [vmem:[%s5047_s12 + $0x90] sm:$0xff]  ;;  %v1906_v59 = vld [vmem:[%s5047_s12 + $0x98] sm:$0xff] }
 0x461   : > { %3399 = vmatpush1.bf16.msra.mxu1 %v3398_v13  ;;  %v3455_v13 = vpack.c.bf16 %v1906_v59, %v1905_v7  ;;  %3012 = vmatprep.mubr.msk.f32.mxu0 (%p65_p0), %vm3667_vm3, %v3668_v31  ;;  %v2877_v7 = vld [vmem:[%s5048_s13 + $0xd8] sm:$0xff] (%p65_p0)  ;;  %v2887_v59 = vld [vmem:[%s5048_s13 + $0x120] sm:$0xff] (%p65_p0) }
 0x462   : > { %3400 = vmatprep.subr.bf16.mxu1 %v3665_v48 }
 0x465   : > { %3402 = vmatpush1.bf16.msra.mxu1 %v3401_v18 }
 0x466   : > { %3403 = vmatprep.subr.bf16.mxu1 %v3665_v48 }
 0x469   : > { %3405 = vmatpush1.bf16.msra.mxu1 %v3404_v22 }
 0x46a   : > { %3406 = vmatprep.subr.bf16.mxu1 %v3665_v48 }
 0x46d   : > { %3408 = vmatpush1.bf16.msra.mxu1 %v3407_v16  ;;  %v2859_v16 = vld [vmem:[%s5048_s13 + $0x58] sm:$0xff] (%p65_p0) }
 0x46e   : > { %3409 = vmatprep.subr.bf16.mxu1 %v3665_v48 }
 0x471   : > { %3411 = vmatpush1.bf16.msra.mxu1 %v3410_v25 }
 0x472   : > { %3412 = vmatprep.subr.bf16.mxu1 %v3665_v48 }
 0x475   : > { %3414 = vmatpush1.bf16.msra.mxu1 %v3413_v27  ;;  %v2861_v27 = vld [vmem:[%s5048_s13 + $0x68] sm:$0xff] (%p65_p0) }
 0x476   : > { %3415 = vmatprep.subr.bf16.mxu1 %v3665_v48  ;;  %v3461_v32 = vpack.c.bf16 (%p65_p0), %v2861_v27, %v2860_v26  ;;  %v2894_v26 = vld [vmem:[%s5048_s13 + $0x150] sm:$0xff] (%p65_p0)  ;;  %v2895_v27 = vld [vmem:[%s5048_s13 + $0x158] sm:$0xff] (%p65_p0) }
 0x479   : > { %3417 = vmatpush1.bf16.msra.mxu1 %v3416_v30  ;;  %v2010_v30 = vld [vmem:[%s5048_s13 + $0x18] sm:$0xff] (%p65_p0) }
 0x47a   : > { %3418 = vmatprep.subr.bf16.mxu1 %v3665_v48 }
 0x47d   : > { %3420 = vmatpush1.bf16.msra.mxu1 %v3419_v33  ;;  %v3476_v33 = vpack.c.bf16 (%p65_p0), %v2010_v30, %v2009_v19  ;;  %v2896_v19 = vld [vmem:[%s5048_s13 + $0x160] sm:$0xff] (%p65_p0)  ;;  %v2897_v30 = vld [vmem:[%s5048_s13 + $0x168] sm:$0xff] (%p65_p0) }
 0x47e   : > { %3421 = vmatprep.subr.bf16.mxu1 %v3665_v48 }
 0x481   : > { %3423 = vmatpush1.bf16.msra.mxu1 %v3422_v36  ;;  %v2011_v36 = vld [vmem:[%s5048_s13 + $0x20] sm:$0xff] (%p65_p0) }
 0x482   : > { %3424 = vmatprep.subr.bf16.mxu1 %v3665_v48 }
 0x485   : > { %3426 = vmatpush1.bf16.msra.mxu1 %v3425_v39  ;;  %v3479_v39 = vpack.c.bf16 (%p65_p0), %v2012_v37, %v2011_v36  ;;  %v2900_v36 = vld [vmem:[%s5048_s13 + $0x180] sm:$0xff] (%p65_p0)  ;;  %v2901_v37 = vld [vmem:[%s5048_s13 + $0x188] sm:$0xff] (%p65_p0) }
 0x486   : > { %3427 = vmatprep.subr.bf16.mxu1 %v3665_v48 }
 0x533   : > { %v1712_v28 = vpop.f32.mrb[12].mxu0  ;;  %v1787_v42 = vpop.f32.mrb[16].mxu1 }
 0x534   : > { %v1792_v43 = vmax.f32 %v1712_v28, %v1787_v42  ;;  %v1714_v44 = vpop.f32.mrb[13].mxu0  ;;  %v1789_v45 = vpop.f32.mrb[17].mxu1  ;;  %v2013_v28 = vld [vmem:[%s5048_s13 + $0x30] sm:$0xff] (%p65_p0)  ;;  %v2014_v42 = vld [vmem:[%s5048_s13 + $0x38] sm:$0xff] (%p65_p0) }
 0x535   : > { %v1793_v46 = vmax.f32 %v1714_v44, %v1789_v45  ;;  %v3482_v44 = vpack.c.bf16 (%p65_p0), %v2014_v42, %v2013_v28  ;;  %v2866_v45 = vld [vmem:[%s5048_s13 + $0x90] sm:$0xff] (%p65_p0) }
 0x536   :  { %v2449_v42 = vld [vmem:[%s5050_s15 + $0x10] sm:$0xff] (%p65_p0) }
 0x537   : > { %2851 = vmatprep.mubr.msk.f32.mxu1 %vm104_vm1, %v1793_v46 }
 0x538   : > { %1882 = vmatmul.mubr.f32.vlgmr.msra.gmra.mrb[18].mxu1 %v1792_v43 }
 0x539   : > { %3429 = vmatpush1.bf16.msra.mxu1 %v3428_v49  ;;  %2852 = vmatprep.mubr.msk.f32.mxu1 %vm104_vm1, %v1793_v46  ;;  %vm2004_vm1 = vcmask 651268   ;;  %v2867_v46 = vld [vmem:[%s5048_s13 + $0x98] sm:$0xff] (%p65_p0)  ;;  %v2015_v49 = vld [vmem:[%s5048_s13 + $0x40] sm:$0xff] (%p65_p0) }
 0x53a   : > { %3430 = vmatprep.subr.bf16.mxu1 %v3665_v48  ;;  %v3470_v51 = vpack.c.bf16 (%p65_p0), %v2867_v46, %v2866_v45  ;;  %v2451_v45 = vld [vmem:[%s5050_s15 + $0x20] sm:$0xff] (%p65_p0)  ;;  %v2452_v46 = vld [vmem:[%s5050_s15 + $0x28] sm:$0xff] (%p65_p0) }
 0x53d   : > { %3432 = vmatpush1.bf16.msra.mxu1 %v3431_v3  ;;  %v3485_v3 = vpack.c.bf16 (%p65_p0), %v2016_v50, %v2015_v49  ;;  %v2453_v49 = vld [vmem:[%s5050_s15 + $0x30] sm:$0xff] (%p65_p0)  ;;  %v3539_v50 = vpack.c.bf16 (%p65_p0), %v2452_v46, %v2451_v45 }
 0x53e   : > { %3433 = vmatprep.subr.bf16.mxu1 %v3665_v48 }
 0x541   : > { %3435 = vmatpush1.bf16.msra.mxu1 %v3434_v54  ;;  %v2881_v54 = vld [vmem:[%s5048_s13 + $0xf0] sm:$0xff] (%p65_p0) }
 0x542   : > { %3436 = vmatprep.subr.bf16.mxu1 %v3665_v48  ;;  %v3503_v61 = vpack.c.bf16 (%p65_p0), %v2882_v55, %v2881_v54  ;;  %v2457_v55 = vld [vmem:[%s5050_s15 + $0x50] sm:$0xff] (%p65_p0) }
 0x545   : > { %3438 = vmatpush1.bf16.msra.mxu1 %v3437_v58  ;;  %v3488_v58 = vpack.c.bf16 (%p65_p0), %v2871_v53, %v2870_v52  ;;  %v2455_v52 = vld [vmem:[%s5050_s15 + $0x40] sm:$0xff] (%p65_p0)  ;;  %v2456_v53 = vld [vmem:[%s5050_s15 + $0x48] sm:$0xff] (%p65_p0) }
 0x546   : > { %3439 = vmatprep.subr.bf16.mxu1 %v3665_v48  ;;  %v3545_v54 = vpack.c.bf16 (%p65_p0), %v2456_v53, %v2455_v52 }
 0x549   : > { %3441 = vmatpush1.bf16.msra.mxu1 %v3440_v62  ;;  %v2872_v62 = vld [vmem:[%s5048_s13 + $0xb0] sm:$0xff] (%p65_p0) }
 0x54a   : > { %3442 = vmatprep.subr.bf16.mxu1 %v3665_v48  ;;  %v3491_v5 = vpack.c.bf16 (%p65_p0), %v2873_v63, %v2872_v62  ;;  %v2461_v63 = vld [vmem:[%s5050_s15 + $0x70] sm:$0xff] (%p65_p0) }
 0x54d   : > { %3444 = vmatpush1.bf16.msra.mxu1 %v3443_v1  ;;  %v2884_v1 = vld [vmem:[%s5048_s13 + $0x108] sm:$0xff] (%p65_p0) }
 0x54e   : > { %3445 = vmatprep.subr.bf16.mxu1 %v3665_v48  ;;  %v3506_v6 = vpack.c.bf16 (%p65_p0), %v2884_v1, %v2883_v0  ;;  %v2544_v0 = vld [vmem:[%s5052_s17] sm:$0xff] (%p65_p0)  ;;  %v2545_v1 = vld [vmem:[%s5052_s17 + $0x8] sm:$0xff] (%p65_p0) }
 0x551   : > { %3447 = vmatpush1.bf16.msra.mxu1 %v3446_v8  ;;  %v2874_v8 = vld [vmem:[%s5048_s13 + $0xc0] sm:$0xff] (%p65_p0) }
 0x552   : > { %3448 = vmatprep.subr.bf16.mxu1 %v3665_v48  ;;  %v3494_v12 = vpack.c.bf16 (%p65_p0), %v2875_v9, %v2874_v8  ;;  %v2547_v8 = vld [vmem:[%s5052_s17 + $0x18] sm:$0xff] (%p65_p0) }
 0x555   : > { %3450 = vmatpush1.bf16.msra.mxu1 %v3449_v11  ;;  %v2886_v11 = vld [vmem:[%s5048_s13 + $0x118] sm:$0xff] (%p65_p0) }
 0x556   : > { %3451 = vmatprep.subr.bf16.mxu1 %v3665_v48  ;;  %v3509_v4 = vpack.c.bf16 (%p65_p0), %v2886_v11, %v2885_v10  ;;  %v2548_v10 = vld [vmem:[%s5052_s17 + $0x20] sm:$0xff] (%p65_p0)  ;;  %v2549_v11 = vld [vmem:[%s5052_s17 + $0x28] sm:$0xff] (%p65_p0) }
 0x559   : > { %3453 = vmatpush1.bf16.msra.mxu1 %v3452_v47  ;;  %v2876_v47 = vld [vmem:[%s5048_s13 + $0xd0] sm:$0xff] (%p65_p0) }
 0x55a   : > { %3454 = vmatprep.subr.bf16.mxu1 %v3665_v48  ;;  %v2858_v48 = vld [vmem:[%s5048_s13 + $0x50] sm:$0xff] (%p65_p0) }
 0x55b   :  { %v3458_v25 = vpack.c.bf16 (%p65_p0), %v2859_v16, %v2858_v48  ;;  %v2892_v48 = vld [vmem:[%s5048_s13 + $0x140] sm:$0xff] (%p65_p0)  ;;  %v2893_v16 = vld [vmem:[%s5048_s13 + $0x148] sm:$0xff] (%p65_p0) }
 0x55d   : > { %3456 = vmatpush1.bf16.msra.mxu1 %v3455_v13  ;;  %3459 = vmatpush3.bf16.msra.mxu0 (%p65_p0), %v3458_v25  ;;  %v2888_v13 = vld [vmem:[%s5048_s13 + $0x128] sm:$0xff] (%p65_p0)  ;;  %v3518_v25 = vpack.c.bf16 (%p65_p0), %v2893_v16, %v2892_v48 }
 0x55e   :  { %3472 = vmatprep.subr.bf16.mxu1 (%p65_p0), %v3666_v24  ;;  %3460 = vmatprep.subr.bf16.mxu0 (%p65_p0), %v3666_v24 }
 0x560   : > { %1972 = vmatmul.mubr.f32.vlgmr.msra.gmra.mrb[20].mxu1 %v1792_v43  ;;  %v3467_v43 = vpack.c.bf16 (%p65_p0), %v2865_v41, %v2864_v40  ;;  %v2447_v40 = vld [vmem:[%s5050_s15] sm:$0xff] (%p65_p0)  ;;  %v2448_v41 = vld [vmem:[%s5050_s15 + $0x8] sm:$0xff] (%p65_p0) }
 0x561   :  { %3035 = vmatprep.mubr.msk.f32.mxu1 (%p65_p0), %vm3667_vm3, %v3668_v31  ;;  %3474 = vmatpush3.bf16.msra.mxu1 (%p65_p0), %v3473_v29  ;;  %v3521_v29 = vpack.c.bf16 (%p65_p0), %v2895_v27, %v2894_v26  ;;  %v3533_v28 = vpack.c.bf16 (%p65_p0), %v2448_v41, %v2447_v40  ;;  %v2552_v27 = vld [vmem:[%s5052_s17 + $0x40] sm:$0xff] (%p65_p0) }
 0x562   :  { %3475 = vmatprep.subr.bf16.mxu1 (%p65_p0), %v3666_v24  ;;  %3462 = vmatpush3.bf16.msra.mxu0 (%p65_p0), %v3461_v32  ;;  %v3524_v32 = vpack.c.bf16 (%p65_p0), %v2897_v30, %v2896_v19  ;;  %v2554_v30 = vld [vmem:[%s5052_s17 + $0x50] sm:$0xf] (%p65_p0) }
 0x563   :  { %3463 = vmatprep.subr.bf16.mxu0 (%p65_p0), %v3666_v24 }
 0x565   :  { %3477 = vmatpush3.bf16.msra.mxu1 (%p65_p0), %v3476_v33  ;;  %v2898_v33 = vld [vmem:[%s5048_s13 + $0x170] sm:$0xff] (%p65_p0) }
 0x566   :  { %3478 = vmatprep.subr.bf16.mxu1 (%p65_p0), %v3666_v24  ;;  %3465 = vmatpush3.bf16.msra.mxu0 (%p65_p0), %v3464_v38  ;;  %v3527_v35 = vpack.c.bf16 (%p65_p0), %v2899_v34, %v2898_v33  ;;  %v3530_v38 = vpack.c.bf16 (%p65_p0), %v2901_v37, %v2900_v36 }
 0x567   :  { %3466 = vmatprep.subr.bf16.mxu0 (%p65_p0), %v3666_v24 }
 0x569   :  { %3480 = vmatpush3.bf16.msra.mxu1 (%p65_p0), %v3479_v39 }
 0x56a   :  { %3481 = vmatprep.subr.bf16.mxu1 (%p65_p0), %v3666_v24  ;;  %3468 = vmatpush3.bf16.msra.mxu0 (%p65_p0), %v3467_v43  ;;  %v2450_v43 = vld [vmem:[%s5050_s15 + $0x18] sm:$0xff] (%p65_p0) }
 0x56b   :  { %3469 = vmatprep.subr.bf16.mxu0 (%p65_p0), %v3666_v24 }
 0x56d   :  { %3483 = vmatpush3.bf16.msra.mxu1 (%p65_p0), %v3482_v44  ;;  %v3536_v44 = vpack.c.bf16 (%p65_p0), %v2450_v43, %v2449_v42 }
 0x56e   :  { %3484 = vmatprep.subr.bf16.mxu1 (%p65_p0), %v3666_v24  ;;  %3471 = vmatpush3.bf16.msra.mxu0 (%p65_p0), %v3470_v51  ;;  %v2454_v51 = vld [vmem:[%s5050_s15 + $0x38] sm:$0xff] (%p65_p0) }
 0x56f   :  { %3487 = vmatprep.subr.bf16.mxu0 (%p65_p0), %v3666_v24 }
 0x571   :  { %3486 = vmatpush3.bf16.msra.mxu1 (%p65_p0), %v3485_v3  ;;  %v3542_v3 = vpack.c.bf16 (%p65_p0), %v2454_v51, %v2453_v49 }
 0x572   :  { %3502 = vmatprep.subr.bf16.mxu1 (%p65_p0), %v3666_v24 }
 0x60b   : > { %v1883_v14 = vpop.f32.mrb[18].mxu1 }
 0x60c   : > { %v1885_v17 = vpop.f32.mrb[19].mxu1 }
 0x60d   :  { %v3512_v17 = vpack.c.bf16 (%p65_p0), %v2888_v13, %v2887_v59 }
 0x633   : > { %v1973_v18 = vpop.f32.mrb[20].mxu1 }
 0x634   : > { %v1977_v21 = vmax.f32 %v1883_v14, %v1973_v18  ;;  %v1975_v22 = vpop.f32.mrb[21].mxu1  ;;  %v3497_v14 = vpack.c.bf16 (%p65_p0), %v2877_v7, %v2876_v47  ;;  %v2878_v18 = vld [vmem:[%s5048_s13 + $0xe0] sm:$0xff] (%p65_p0)  ;;  %v2551_v47 = vld [vmem:[%s5052_s17 + $0x38] sm:$0xff] (%p65_p0) }
 0x635   :  { %v2890_v22 = vld [vmem:[%s5048_s13 + $0x138] sm:$0xff] (%p65_p0) }
 0x636   : > { %v1985_v2 = vadd.f32 %v2853_v20, %v1977_v21  ;;  %v2879_v20 = vld [vmem:[%s5048_s13 + $0xe8] sm:$0xff] (%p65_p0)  ;;  %v2889_v21 = vld [vmem:[%s5048_s13 + $0x130] sm:$0xff] (%p65_p0) }
 0x638   : > { %v1986_v15 = vmax.f32 %v1985_v2, 0.0  ;;  %67 = sbr.rel (!%p65_p0) target bundleno = 6 (0x6), region = 125  ;;  %v3500_v2 = vpack.c.bf16 (%p65_p0), %v2879_v20, %v2878_v18 }
 0x63a   : > { %1989 = vst.msk [vmem:[%s1987_s20] sm:$0x1] %vm1988_vm13, %v1986_v15 }
 0x63b   : > { %2854 = vst.msk [vmem:[%s1987_s20 + $0x1] sm:$0x2] %vm1992_vm14, %v1986_v15 }
 0x63c   : > { %2855 = vst.msk [vmem:[%s1987_s20 + $0x2] sm:$0x4] %vm1996_vm15, %v1986_v15 }
 0x63d   : > { %2856 = vst.msk [vmem:[%s1987_s20 + $0x3] sm:$0x8] %vm2000_vm0, %v1986_v15 }
 0x63e   : > { %2857 = vst.msk [vmem:[%s1987_s20 + $0x4] sm:$0x10] %vm2004_vm1, %v1986_v15  ;;  %v3515_v15 = vpack.c.bf16 (%p65_p0), %v2890_v22, %v2889_v21 }
 0x645   :  { %v2018_v56 = vld [vmem:[#allocation2 + $0x2] sm:$0x3]  ;;  %v2006_v60 = vld [vmem:[#allocation2] sm:$0x3]  ;;  %v2178_v23 = vld [vmem:[#allocation2 + $0x4] sm:$0x3] }
 0x646   :  { %3013 = vmatmul.mubr.msk.f32.vlgmr.msra.gmra.mrb[0].mxu0 %vm2030_vm4, %v2018_v56  ;;  %3036 = vmatmul.mubr.msk.f32.vlgmr.msra.gmra.mrb[0].mxu1 %vm2030_vm4, %v2006_v60  ;;  %v2265_v57 = vld [vmem:[#allocation2 + $0x6] sm:$0x3]  ;;  %v2352_v39 = vld [vmem:[#allocation2 + $0x8] sm:$0x3]  ;;  %v2458_v56 = vld [vmem:[%s5050_s15 + $0x58] sm:$0xff] }
 0x647   :  { %3489 = vmatpush3.bf16.msra.mxu0 %v3488_v58  ;;  %3504 = vmatpush3.bf16.msra.mxu1 %v3503_v61  ;;  %v3548_v58 = vpack.c.bf16 %v2458_v56, %v2457_v55  ;;  %v2459_v60 = vld [vmem:[%s5050_s15 + $0x60] sm:$0xff]  ;;  %v2460_v61 = vld [vmem:[%s5050_s15 + $0x68] sm:$0xff] }
 0x648   :  { %3490 = vmatprep.subr.bf16.mxu0 %v3666_v24  ;;  %3505 = vmatprep.subr.bf16.mxu1 %v3666_v24  ;;  %v3551_v62 = vpack.c.bf16 %v2460_v61, %v2459_v60 }
 0x649   :  { %3058 = vmatprep.mubr.msk.f32.mxu0 %vm3667_vm3, %v3668_v31  ;;  %3081 = vmatprep.mubr.msk.f32.mxu1 %vm3667_vm3, %v3668_v31 }
 0x64b   :  { %3492 = vmatpush3.bf16.msra.mxu0 %v3491_v5  ;;  %3507 = vmatpush3.bf16.msra.mxu1 %v3506_v6  ;;  %v2546_v5 = vld [vmem:[%s5052_s17 + $0x10] sm:$0xff]  ;;  %v3554_v6 = vpack.c.bf16 %v2545_v1, %v2544_v0 }
 0x64c   :  { %3493 = vmatprep.subr.bf16.mxu0 %v3666_v24  ;;  %3508 = vmatprep.subr.bf16.mxu1 %v3666_v24  ;;  %v3557_v9 = vpack.c.bf16 %v2547_v8, %v2546_v5 }
 0x64f   :  { %3495 = vmatpush3.bf16.msra.mxu0 %v3494_v12  ;;  %3510 = vmatpush3.bf16.msra.mxu1 %v3509_v4  ;;  %v3560_v12 = vpack.c.bf16 %v2549_v11, %v2548_v10  ;;  %v2550_v4 = vld [vmem:[%s5052_s17 + $0x30] sm:$0xff] }
 0x650   :  { %3496 = vmatprep.subr.bf16.mxu0 %v3666_v24  ;;  %3511 = vmatprep.subr.bf16.mxu1 %v3666_v24  ;;  %v3563_v7 = vpack.c.bf16 %v2551_v47, %v2550_v4 }
 0x653   :  { %3498 = vmatpush3.bf16.msra.mxu0 %v3497_v14  ;;  %3513 = vmatpush3.bf16.msra.mxu1 %v3512_v17 }
 0x654   :  { %3499 = vmatprep.subr.bf16.mxu0 %v3666_v24  ;;  %3514 = vmatprep.subr.bf16.mxu1 %v3666_v24 }
 0x657   :  { %3501 = vmatpush3.bf16.msra.mxu0 %v3500_v2  ;;  %3516 = vmatpush3.bf16.msra.mxu1 %v3515_v15 }
 0x658   :  { %3517 = vmatprep.subr.bf16.mxu0 %v3666_v24  ;;  %3532 = vmatprep.subr.bf16.mxu1 %v3666_v24 }
 0x65a   :  { %3059 = vmatmul.mubr.msk.f32.vlgmr.msra.gmra.mrb[2].mxu0 %vm2030_vm4, %v2178_v23  ;;  %3082 = vmatmul.mubr.msk.f32.vlgmr.msra.gmra.mrb[2].mxu1 %vm2030_vm4, %v2265_v57  ;;  %v2903_v23 = vld [vmem:[%s5049_s14] ss:$0 sm:$0xff] }
 0x65b   :  { %3519 = vmatpush3.bf16.msra.mxu0 %v3518_v25  ;;  %3104 = vmatprep.mubr.msk.f32.mxu0 %vm3667_vm3, %v3668_v31 }
 0x65c   :  { %3520 = vmatprep.subr.bf16.mxu0 %v3666_v24  ;;  %3137 = vmatprep.mubr.msk.f32.mxu1 %vm3667_vm3, %v3668_v31 }
 0x65d   :  { %3534 = vmatpush3.bf16.msra.mxu1 %v3533_v28 }
 0x65e   :  { %3535 = vmatprep.subr.bf16.mxu1 %v3666_v24 }
 0x65f   :  { %3522 = vmatpush3.bf16.msra.mxu0 %v3521_v29  ;;  %v2553_v29 = vld [vmem:[%s5052_s17 + $0x48] sm:$0xff]  ;;  %s3631_s17 = scalar_lea.vmem %s2648_s6, 32 }
 0x660   :  { %3523 = vmatprep.subr.bf16.mxu0 %v3666_v24  ;;  %v3566_v19 = vpack.c.bf16 %v2553_v29, %v2552_v27  ;;  %p3632_p1 = scmp.ne.s32.totalorder %s2648_s6, %s3631_s17  ;;  %p3637_p3 = scmp.lt.s32.totalorder %s3631_s17, %s3631_s17 }
 0x661   :  { %3537 = vmatpush3.bf16.msra.mxu1 %v3536_v44 }
 0x662   :  { %3538 = vmatprep.subr.bf16.mxu1 %v3666_v24  ;;  %p3638_p4 = por %p3637_p3, %p3636_p2 }
 0x663   :  { %3525 = vmatpush3.bf16.msra.mxu0 %v3524_v32  ;;  %v2904_v32 = vld [vmem:[%s5051_s16] ss:$0 sm:$0xff] }
 0x664   :  { %3526 = vmatprep.subr.bf16.mxu0 %v3666_v24  ;;  %p3639_p5 = pnand %p3638_p4, %p3632_p1 }
 0x665   :  { %3540 = vmatpush3.bf16.msra.mxu1 %v3539_v50 }
 0x666   :  { %3541 = vmatprep.subr.bf16.mxu1 %v3666_v24 }
 0x667   :  { %3528 = vmatpush3.bf16.msra.mxu0 %v3527_v35 }
 0x668   :  { %3529 = vmatprep.subr.bf16.mxu0 %v3666_v24 }
 0x669   :  { %3543 = vmatpush3.bf16.msra.mxu1 %v3542_v3 }
 0x66a   :  { %3544 = vmatprep.subr.bf16.mxu1 %v3666_v24 }
 0x66b   :  { %3531 = vmatpush3.bf16.msra.mxu0 %v3530_v38 }
 0x66c   :  { %3553 = vmatprep.subr.bf16.mxu0 %v3666_v24 }
 0x66d   :  { %3546 = vmatpush3.bf16.msra.mxu1 %v3545_v54 }
 0x66e   :  { %3105 = vmatmul.mubr.msk.f32.vlgmr.msra.gmra.mrb[4].mxu0 %vm2030_vm4, %v2352_v39  ;;  %3547 = vmatprep.subr.bf16.mxu1 %v3666_v24 }
 0x66f   :  { %3162 = vmatprep.mubr.msk.f32.mxu0 %vm3667_vm3, %v3668_v31  ;;  %3555 = vmatpush3.bf16.msra.mxu0 %v3554_v6 }
 0x670   :  { %3556 = vmatprep.subr.bf16.mxu0 %v3666_v24 }
 0x671   :  { %3549 = vmatpush3.bf16.msra.mxu1 %v3548_v58 }
 0x672   :  { %3550 = vmatprep.subr.bf16.mxu1 %v3666_v24 }
 0x673   :  { %3558 = vmatpush3.bf16.msra.mxu0 %v3557_v9 }
 0x674   :  { %3559 = vmatprep.subr.bf16.mxu0 %v3666_v24 }
 0x675   :  { %3552 = vmatpush3.bf16.msra.mxu1 %v3551_v62 }
 0x676   :  { %3135 = vmatprep.subr.mxu1 %v3668_v31 }
 0x677   :  { %3561 = vmatpush3.bf16.msra.mxu0 %v3560_v12 }
 0x678   :  { %3562 = vmatprep.subr.bf16.mxu0 %v3666_v24 }
 0x679   :  { %3136 = vmatpush3.msra.mxu1 %v2461_v63 }
 0x67b   :  { %3564 = vmatpush3.bf16.msra.mxu0 %v3563_v7 }
 0x67c   :  { %3565 = vmatprep.subr.bf16.mxu0 %v3666_v24 }
 0x67f   :  { %3567 = vmatpush3.bf16.msra.mxu0 %v3566_v19 }
 0x680   :  { %3160 = vmatprep.subr.mxu0 %v3668_v31  ;;  %v2906_v31 = vld [vmem:[%s5053_s18] ss:$0 sm:$0xff] }
 0x683   :  { %3161 = vmatpush3.msk.msra.mxu0 %vm552_vm2, %v2554_v30 }
 0x719   :  { %v2100_v59 = vpop.f32.mrb[0].mxu0  ;;  %v2173_v14 = vpop.f32.mrb[0].mxu1 }
 0x71a   :  { %v3014_v13 = vpop.f32.mrb[1].mxu0  ;;  %v2174_v17 = vadd.f32 %v2173_v14, %v2100_v59  ;;  %v3037_v18 = vpop.f32.mrb[1].mxu1 }
 0x72d   :  { %v2259_v20 = vpop.f32.mrb[2].mxu0  ;;  %v2346_v2 = vpop.f32.mrb[2].mxu1 }
 0x72e   :  { %v2263_v21 = vadd.f32 %v2259_v20, %v2174_v17  ;;  %v3060_v22 = vpop.f32.mrb[3].mxu0  ;;  %v3083_v15 = vpop.f32.mrb[3].mxu1 }
 0x730   :  { %v2350_v48 = vadd.f32 %v2346_v2, %v2263_v21 }
 0x741   :  { %v2433_v16 = vpop.f32.mrb[4].mxu0 }
 0x742   :  { %v2437_v25 = vadd.f32 %v2433_v16, %v2350_v48  ;;  %v3106_v57 = vpop.f32.mrb[5].mxu0 }
 0x744   :  { %v2445_v26 = vadd.f32 %v2903_v23, %v2437_v25 }
 0x746   :  { %v2446_v24 = vmax.f32 %v2445_v26, 0.0 }
 0x748   :  { %3138 = vmatmul.mubr.msk.f32.vlgmr.msra.gmra.mrb[4].mxu1 %vm2469_vm5, %v2446_v24 }
 0x81b   :  { %v2539_v33 = vpop.f32.mrb[4].mxu1 }
 0x81c   :  { %v2540_v34 = vadd.f32 %v2904_v32, %v2539_v33  ;;  %v3139_v35 = vpop.f32.mrb[5].mxu1 }
 0x81e   :  { %v2543_v36 = vmax.f32 %v2540_v34, 0.0 }
 0x820   :  { %3163 = vmatmul.mubr.msk.f32.vlgmr.msra.gmra.mrb[6].mxu0 %vm1108_vm9, %v2543_v36 }
 0x8f3   :  { %v2636_v37 = vpop.f32.mrb[6].mxu0 }
 0x8f4   :  { %v2637_v38 = vadd.f32 %v2906_v31, %v2636_v37  ;;  %v3164_v39 = vpop.f32.mrb[7].mxu0 }
 0x8f6   :  { %2640 = vst [vmem:[#allocation3] sm:$0x3] %v2637_v38 }
 0x8f7   :  { %3642 = shalt.err (!%p3639_p5)
}
 0x8f8   :  { %s3643_s8 = scalar_lea.hbm %s5054_s19, 32 }
 0x8f9   :  { %p3644_p6 = scmp.ne.s32.totalorder %s5054_s19, %s3643_s8  ;;  %p3647_p7 = scmp.lt.u32.totalorder %s3643_s8, %s5054_s19 }
 0x8fb   :  { %p3649_p8 = pnand %p3647_p7, %p3644_p6 }
 0x8fd   :  { %3652 = shalt.err (!%p3649_p8)
}
 0x8fe   :  { %2650 = dma.vmem_to_hbm [thread:$0]  %s2648_s6, 32, %s5054_s19, [#allocation4]  }
 0x8ff   :  { %3657 = dma.done.wait [#allocation4], 32  }
 0x900   :  { %3658 = vsyncadd [#allocation4], 4294967264 }
 0x901   :  { %2654 = vsyncpa [#allocation4], 1 }

</bundles_post_ra>
